<compile_context>
chip_gen: v7x
topology: tpu7x:2x2x1
jax: 0.10.0
libtpu: 0.0.40
codegen_flags: <defaults>
</compile_context>

<pallas_src>
import functools

import jax
import jax.numpy as jnp
from jax.experimental import pallas as pl
from jax.experimental.pallas import tpu as pltpu

_LANE = 128


def _round_up(a, m):
    return ((a + m - 1) // m) * m


def _leaky_relu(v, alpha=0.2):
    # Identical to where(v > 0, v, alpha*v) for alpha in (0, 1).
    return jnp.maximum(v, alpha * v)


def encoder_kernel(x_ref, y_ref,
                   w1_ref, b1_ref,
                   w2_ref, b2_ref,
                   w3_ref, b3_ref,
                   wh_ref, bh_ref,
                   out_ref):
    cdt = w1_ref.dtype  # MXU operand dtype (bf16 by default); accumulation is f32.
    # h = LeakyReLU((x + y) @ W1 + b1)
    xy = (x_ref[...] + y_ref[...]).astype(cdt)
    h = jnp.dot(xy, w1_ref[...], preferred_element_type=jnp.float32) + b1_ref[...]
    h = _leaky_relu(h)
    # h = LeakyReLU(h @ W2 + b2)
    h = jnp.dot(h.astype(cdt), w2_ref[...], preferred_element_type=jnp.float32) + b2_ref[...]
    h = _leaky_relu(h)
    # h = LeakyReLU(h @ W3 + b3)
    h = jnp.dot(h.astype(cdt), w3_ref[...], preferred_element_type=jnp.float32) + b3_ref[...]
    h = _leaky_relu(h)
    # Fused heads: [mean | log_var] = h @ [Wm | Wv] + [bm | bv] (zero-padded lanes stay 0)
    out_ref[...] = (jnp.dot(h.astype(cdt), wh_ref[...], preferred_element_type=jnp.float32)
                    + bh_ref[...]).astype(out_ref.dtype)


def prepare_params(params, *, compute_dtype=jnp.bfloat16):
    """One-time packing of PyTorch-convention params (do at model load, not per call).

    nn.Linear weights (out, in) -> (in, out), zero-padded so every matmul
    output dim is a multiple of 128 lanes; mean/var heads fused into a single
    (hidden_pad, 2*output_pad) matmul. Weights cast to `compute_dtype` (bf16),
    biases kept f32 (bias add / LeakyReLU run in f32).
    """
    input_dim = params["w1"].shape[1]
    hidden = params["w1"].shape[0]
    output = params["wm"].shape[0]
    hp = _round_up(hidden, _LANE)
    op = _round_up(output, _LANE)

    def w_pad(w, rows, cols):            # (out, in) -> (in, out), zero-padded
        wt = jnp.asarray(w, jnp.float32).T
        return jnp.pad(wt, ((0, rows - wt.shape[0]), (0, cols - wt.shape[1])))

    def b_pad(b, n):                     # (out,) -> (1, n), zero-padded, f32
        b = jnp.asarray(b, jnp.float32)
        return jnp.pad(b, (0, n - b.shape[0])).reshape(1, -1)

    wh = jnp.concatenate([w_pad(params["wm"], hp, op), w_pad(params["wv"], hp, op)], axis=1)
    bh = jnp.concatenate([b_pad(params["bm"], op), b_pad(params["bv"], op)], axis=1)
    return dict(
        w1=w_pad(params["w1"], input_dim, hp).astype(compute_dtype), b1=b_pad(params["b1"], hp),
        w2=w_pad(params["w2"], hp, hp).astype(compute_dtype),        b2=b_pad(params["b2"], hp),
        w3=w_pad(params["w3"], hp, hp).astype(compute_dtype),        b3=b_pad(params["b3"], hp),
        wh=wh.astype(compute_dtype),                                  bh=bh,
    )


def _resident_spec(shape):
    """Weights/biases: constant index_map (resident in VMEM), single-buffered."""
    try:
        return pl.BlockSpec(shape, lambda i: (0, 0), pipeline_mode=pl.Buffered(1))
    except TypeError:  # older BlockSpec signature without pipeline_mode
        return pl.BlockSpec(shape, lambda i: (0, 0))


def _choose_tb(batch, tb):
    b8 = _round_up(max(batch, 1), 8)
    tb = _round_up(min(tb, b8), 8)
    # v7x megacore: keep the (parallel) batch grid >= 2 steps when the batch
    # is large enough to split, so both TensorCores get work.
    if b8 >= 16 and pl.cdiv(b8, tb) < 2:
        tb = _round_up(pl.cdiv(b8, 2), 8)
    return tb


@functools.partial(jax.jit, static_argnames=("output_dim", "tb"))
def encoder_forward(x, y, packed, *, output_dim, tb=1024):
    """Forward pass. `packed` comes from prepare_params(); output_dim is the true head width."""
    B, input_dim = x.shape
    hp = packed["w1"].shape[1]           # padded hidden (multiple of 128)
    two_out = packed["wh"].shape[1]      # 2 * padded output (multiple of 128)
    op = two_out // 2
    assert packed["w1"].shape[0] == input_dim
    assert output_dim <= op

    tb = _choose_tb(B, tb)
    grid = (pl.cdiv(B, tb),)             # ragged last batch block is masked by Pallas

    act_spec = pl.BlockSpec((tb, input_dim), lambda i: (i, 0))
    out_spec = pl.BlockSpec((tb, two_out), lambda i: (i, 0))

    # Exact VMEM budget: double-buffered x/y/out tiles + resident params +
    # live intermediates, plus headroom; capped below v7x's 64 MiB VMEM.
    w_itemsize = jnp.dtype(packed["w1"].dtype).itemsize
    act_bytes = 2 * (2 * tb * input_dim * 4) + 2 * tb * two_out * 4
    param_bytes = sum(int(v.size) * jnp.dtype(v.dtype).itemsize for v in packed.values())
    interm_bytes = tb * input_dim * w_itemsize + tb * hp * (4 + w_itemsize) + tb * two_out * 4
    vmem_bytes = int(min(act_bytes + param_bytes + interm_bytes + (4 << 20), 48 << 20))

    out = pl.pallas_call(
        encoder_kernel,
        out_shape=jax.ShapeDtypeStruct((B, two_out), jnp.float32),
        grid=grid,
        in_specs=[
            act_spec, act_spec,
            _resident_spec((input_dim, hp)), _resident_spec((1, hp)),
            _resident_spec((hp, hp)), _resident_spec((1, hp)),
            _resident_spec((hp, hp)), _resident_spec((1, hp)),
            _resident_spec((hp, two_out)), _resident_spec((1, two_out)),
        ],
        out_specs=out_spec,
        compiler_params=pltpu.CompilerParams(
            dimension_semantics=("parallel",),
            vmem_limit_bytes=vmem_bytes,
        ),
    )(x, y,
      packed["w1"], packed["b1"],
      packed["w2"], packed["b2"],
      packed["w3"], packed["b3"],
      packed["wh"], packed["bh"])

    # Lane-aligned head split (mean starts at lane 0, log_var at lane `op`);
    # trailing zero-padded lanes are dropped.
    mean = out[:, :output_dim]
    log_var = out[:, op:op + output_dim]
    return mean, log_var


def init_params(key, input_dim, hidden_dim, output_dim):
    """Deterministic synthetic init; shapes match nn.Linear (out, in) / (out,)."""
    ks = jax.random.split(key, 10)

    def lin(kw, kb, out_d, in_d):
        scale = 1.0 / jnp.sqrt(in_d)
        w = jax.random.uniform(kw, (out_d, in_d), jnp.float32, -scale, scale)
        b = jax.random.uniform(kb, (out_d,), jnp.float32, -scale, scale)
        return w, b

    w1, b1 = lin(ks[0], ks[1], hidden_dim, input_dim)
    w2, b2 = lin(ks[2], ks[3], hidden_dim, hidden_dim)
    w3, b3 = lin(ks[4], ks[5], hidden_dim, hidden_dim)
    wm, bm = lin(ks[6], ks[7], output_dim, hidden_dim)
    wv, bv = lin(ks[8], ks[9], output_dim, hidden_dim)
    return dict(w1=w1, b1=b1, w2=w2, b2=b2, w3=w3, b3=b3,
                wm=wm, bm=bm, wv=wv, bv=bv)


def encoder_reference(x, y, p):
    """Pure-JAX f32 reference mirroring the PyTorch forward (high-precision matmuls)."""
    hi = jax.lax.Precision.HIGHEST

    def lrelu(v):
        return jnp.where(v > 0, v, 0.2 * v)

    h = lrelu(jnp.dot(x + y, p["w1"].T, precision=hi) + p["b1"])
    h = lrelu(jnp.dot(h, p["w2"].T, precision=hi) + p["b2"])
    h = lrelu(jnp.dot(h, p["w3"].T, precision=hi) + p["b3"])
    mean = jnp.dot(h, p["wm"].T, precision=hi) + p["bm"]
    log_var = jnp.dot(h, p["wv"].T, precision=hi) + p["bv"]
    return mean, log_var


if __name__ == "__main__":
    # Module-default feature dims (330 / 100 / 330), modest batch. With the
    # default tb the grid is clamped to 2 steps here (B=160 -> tb=80), which
    # exercises the multi-step / megacore path and the ragged-block machinery.
    B, INPUT_DIM, HIDDEN_DIM, OUTPUT_DIM = 160, 330, 100, 330

    key = jax.random.PRNGKey(0)
    kx, ky, kp = jax.random.split(key, 3)
    x = jax.random.normal(kx, (B, INPUT_DIM), jnp.float32)
    y = jax.random.normal(ky, (B, INPUT_DIM), jnp.float32)
    params = init_params(kp, INPUT_DIM, HIDDEN_DIM, OUTPUT_DIM)

    # One-time: transpose + 128-lane zero-pad + bf16 cast + head fusion.
    packed = prepare_params(params)

    mean, log_var = encoder_forward(x, y, packed, output_dim=OUTPUT_DIM, tb=1024)
    jax.block_until_ready((mean, log_var))

    ref_mean, ref_logvar = encoder_reference(x, y, params)
    assert mean.shape == (B, OUTPUT_DIM) and log_var.shape == (B, OUTPUT_DIM)
    # bf16 MXU operands with f32 accumulation vs. f32 HIGHEST-precision reference.
    assert jnp.allclose(mean, ref_mean, atol=2e-2, rtol=2e-2), \
        float(jnp.max(jnp.abs(mean - ref_mean)))
    assert jnp.allclose(log_var, ref_logvar, atol=2e-2, rtol=2e-2), \
        float(jnp.max(jnp.abs(log_var - ref_logvar)))
    assert float(jnp.mean(jnp.abs(mean - ref_mean))) < 3e-3
    assert float(jnp.mean(jnp.abs(log_var - ref_logvar))) < 3e-3

    print("KERNEL_OK")
</pallas_src>

<mosaic_0001>
module attributes {stable_mosaic.version = 11 : i64} {
  func.func @encoder_kernel(%arg0: i32, %arg1: memref<80x330xf32, #tpu.memory_space<vmem>>, %arg2: memref<80x330xf32, #tpu.memory_space<vmem>>, %arg3: memref<330x128xbf16, #tpu.memory_space<vmem>>, %arg4: memref<1x128xf32, #tpu.memory_space<vmem>>, %arg5: memref<128x128xbf16, #tpu.memory_space<vmem>>, %arg6: memref<1x128xf32, #tpu.memory_space<vmem>>, %arg7: memref<128x128xbf16, #tpu.memory_space<vmem>>, %arg8: memref<1x128xf32, #tpu.memory_space<vmem>>, %arg9: memref<128x768xbf16, #tpu.memory_space<vmem>>, %arg10: memref<1x768xf32, #tpu.memory_space<vmem>>, %arg11: memref<80x768xf32, #tpu.memory_space<vmem>>) attributes {dimension_semantics = [#tpu.dimension_semantics<parallel>], iteration_bounds = array<i64: 2>, scalar_prefetch = 0 : i64, scratch_operands = 0 : i64, tpu.core_type = #tpu.core_type<tc>, window_params = [{transform_indices = @transform_0, window_bounds = array<i64: 80, 330>}, {transform_indices = @transform_1, window_bounds = array<i64: 80, 330>}, {pipeline_mode = #tpu.pipeline_mode<synchronous>, transform_indices = @transform_2, window_bounds = array<i64: 330, 128>}, {pipeline_mode = #tpu.pipeline_mode<synchronous>, transform_indices = @transform_3, window_bounds = array<i64: 1, 128>}, {pipeline_mode = #tpu.pipeline_mode<synchronous>, transform_indices = @transform_4, window_bounds = array<i64: 128, 128>}, {pipeline_mode = #tpu.pipeline_mode<synchronous>, transform_indices = @transform_5, window_bounds = array<i64: 1, 128>}, {pipeline_mode = #tpu.pipeline_mode<synchronous>, transform_indices = @transform_6, window_bounds = array<i64: 128, 128>}, {pipeline_mode = #tpu.pipeline_mode<synchronous>, transform_indices = @transform_7, window_bounds = array<i64: 1, 128>}, {pipeline_mode = #tpu.pipeline_mode<synchronous>, transform_indices = @transform_8, window_bounds = array<i64: 128, 768>}, {pipeline_mode = #tpu.pipeline_mode<synchronous>, transform_indices = @transform_9, window_bounds = array<i64: 1, 768>}, {transform_indices = @transform_10, window_bounds = array<i64: 80, 768>}]} {
    %c0 = arith.constant 0 : index
    %c0_0 = arith.constant 0 : index
    %0 = vector.load %arg1[%c0, %c0_0] : memref<80x330xf32, #tpu.memory_space<vmem>>, vector<80x330xf32>
    %c0_1 = arith.constant 0 : index
    %c0_2 = arith.constant 0 : index
    %1 = vector.load %arg2[%c0_1, %c0_2] : memref<80x330xf32, #tpu.memory_space<vmem>>, vector<80x330xf32>
    %2 = arith.addf %0, %1 : vector<80x330xf32>
    %3 = arith.truncf %2 : vector<80x330xf32> to vector<80x330xbf16>
    %c0_3 = arith.constant 0 : index
    %c0_4 = arith.constant 0 : index
    %4 = vector.load %arg3[%c0_3, %c0_4] : memref<330x128xbf16, #tpu.memory_space<vmem>>, vector<330x128xbf16>
    %cst = arith.constant dense<0.000000e+00> : vector<80x128xf32>
    %5 = tpu.matmul %3, %4, %cst {dimension_numbers = #tpu.dot_dimension_numbers<[1], [0], [0], [1], [0, 0, 1, 1], [], []>} : vector<80x330xbf16>, vector<330x128xbf16>, vector<80x128xf32> -> vector<80x128xf32>
    %c0_5 = arith.constant 0 : index
    %c0_6 = arith.constant 0 : index
    %6 = vector.load %arg4[%c0_5, %c0_6] : memref<1x128xf32, #tpu.memory_space<vmem>>, vector<1x128xf32>
    %7 = vector.broadcast %6 : vector<1x128xf32> to vector<80x128xf32>
    %8 = arith.addf %5, %7 : vector<80x128xf32>
    %cst_7 = arith.constant 2.000000e-01 : f32
    %9 = vector.broadcast %cst_7 : f32 to vector<80x128xf32>
    %10 = arith.mulf %9, %8 : vector<80x128xf32>
    %11 = arith.maximumf %8, %10 : vector<80x128xf32>
    %12 = arith.truncf %11 : vector<80x128xf32> to vector<80x128xbf16>
    %c0_8 = arith.constant 0 : index
    %c0_9 = arith.constant 0 : index
    %13 = vector.load %arg5[%c0_8, %c0_9] : memref<128x128xbf16, #tpu.memory_space<vmem>>, vector<128x128xbf16>
    %cst_10 = arith.constant dense<0.000000e+00> : vector<80x128xf32>
    %14 = tpu.matmul %12, %13, %cst_10 {dimension_numbers = #tpu.dot_dimension_numbers<[1], [0], [0], [1], [0, 0, 1, 1], [], []>} : vector<80x128xbf16>, vector<128x128xbf16>, vector<80x128xf32> -> vector<80x128xf32>
    %c0_11 = arith.constant 0 : index
    %c0_12 = arith.constant 0 : index
    %15 = vector.load %arg6[%c0_11, %c0_12] : memref<1x128xf32, #tpu.memory_space<vmem>>, vector<1x128xf32>
    %16 = vector.broadcast %15 : vector<1x128xf32> to vector<80x128xf32>
    %17 = arith.addf %14, %16 : vector<80x128xf32>
    %cst_13 = arith.constant 2.000000e-01 : f32
    %18 = vector.broadcast %cst_13 : f32 to vector<80x128xf32>
    %19 = arith.mulf %18, %17 : vector<80x128xf32>
    %20 = arith.maximumf %17, %19 : vector<80x128xf32>
    %21 = arith.truncf %20 : vector<80x128xf32> to vector<80x128xbf16>
    %c0_14 = arith.constant 0 : index
    %c0_15 = arith.constant 0 : index
    %22 = vector.load %arg7[%c0_14, %c0_15] : memref<128x128xbf16, #tpu.memory_space<vmem>>, vector<128x128xbf16>
    %cst_16 = arith.constant dense<0.000000e+00> : vector<80x128xf32>
    %23 = tpu.matmul %21, %22, %cst_16 {dimension_numbers = #tpu.dot_dimension_numbers<[1], [0], [0], [1], [0, 0, 1, 1], [], []>} : vector<80x128xbf16>, vector<128x128xbf16>, vector<80x128xf32> -> vector<80x128xf32>
    %c0_17 = arith.constant 0 : index
    %c0_18 = arith.constant 0 : index
    %24 = vector.load %arg8[%c0_17, %c0_18] : memref<1x128xf32, #tpu.memory_space<vmem>>, vector<1x128xf32>
    %25 = vector.broadcast %24 : vector<1x128xf32> to vector<80x128xf32>
    %26 = arith.addf %23, %25 : vector<80x128xf32>
    %cst_19 = arith.constant 2.000000e-01 : f32
    %27 = vector.broadcast %cst_19 : f32 to vector<80x128xf32>
    %28 = arith.mulf %27, %26 : vector<80x128xf32>
    %29 = arith.maximumf %26, %28 : vector<80x128xf32>
    %30 = arith.truncf %29 : vector<80x128xf32> to vector<80x128xbf16>
    %c0_20 = arith.constant 0 : index
    %c0_21 = arith.constant 0 : index
    %31 = vector.load %arg9[%c0_20, %c0_21] : memref<128x768xbf16, #tpu.memory_space<vmem>>, vector<128x768xbf16>
    %cst_22 = arith.constant dense<0.000000e+00> : vector<80x768xf32>
    %32 = tpu.matmul %30, %31, %cst_22 {dimension_numbers = #tpu.dot_dimension_numbers<[1], [0], [0], [1], [0, 0, 1, 1], [], []>} : vector<80x128xbf16>, vector<128x768xbf16>, vector<80x768xf32> -> vector<80x768xf32>
    %c0_23 = arith.constant 0 : index
    %c0_24 = arith.constant 0 : index
    %33 = vector.load %arg10[%c0_23, %c0_24] : memref<1x768xf32, #tpu.memory_space<vmem>>, vector<1x768xf32>
    %34 = vector.broadcast %33 : vector<1x768xf32> to vector<80x768xf32>
    %35 = arith.addf %32, %34 : vector<80x768xf32>
    %c0_25 = arith.constant 0 : index
    %c0_26 = arith.constant 0 : index
    %36 = vector.load %arg11[%c0_25, %c0_26] : memref<80x768xf32, #tpu.memory_space<vmem>>, vector<80x768xf32>
    tpu.vector_store %arg11[%c0_25, %c0_26], %35 {strides = array<i32>} : memref<80x768xf32, #tpu.memory_space<vmem>>, vector<80x768xf32>,
    return
  }
  func.func @transform_0(%arg0: i32) -> (i32, i32) {
    %c0_i32 = arith.constant 0 : i32
    %c0_i32_0 = arith.constant 0 : i32
    return %arg0, %c0_i32 : i32, i32
  }
  func.func @transform_1(%arg0: i32) -> (i32, i32) {
    %c0_i32 = arith.constant 0 : i32
    %c0_i32_0 = arith.constant 0 : i32
    return %arg0, %c0_i32 : i32, i32
  }
  func.func @transform_2(%arg0: i32) -> (i32, i32) {
    %c0_i32 = arith.constant 0 : i32
    %c0_i32_0 = arith.constant 0 : i32
    %c0_i32_1 = arith.constant 0 : i32
    return %c0_i32, %c0_i32_0 : i32, i32
  }
  func.func @transform_3(%arg0: i32) -> (i32, i32) {
    %c0_i32 = arith.constant 0 : i32
    %c0_i32_0 = arith.constant 0 : i32
    %c0_i32_1 = arith.constant 0 : i32
    return %c0_i32, %c0_i32_0 : i32, i32
  }
  func.func @transform_4(%arg0: i32) -> (i32, i32) {
    %c0_i32 = arith.constant 0 : i32
    %c0_i32_0 = arith.constant 0 : i32
    %c0_i32_1 = arith.constant 0 : i32
    return %c0_i32, %c0_i32_0 : i32, i32
  }
  func.func @transform_5(%arg0: i32) -> (i32, i32) {
    %c0_i32 = arith.constant 0 : i32
    %c0_i32_0 = arith.constant 0 : i32
    %c0_i32_1 = arith.constant 0 : i32
    return %c0_i32, %c0_i32_0 : i32, i32
  }
  func.func @transform_6(%arg0: i32) -> (i32, i32) {
    %c0_i32 = arith.constant 0 : i32
    %c0_i32_0 = arith.constant 0 : i32
    %c0_i32_1 = arith.constant 0 : i32
    return %c0_i32, %c0_i32_0 : i32, i32
  }
  func.func @transform_7(%arg0: i32) -> (i32, i32) {
    %c0_i32 = arith.constant 0 : i32
    %c0_i32_0 = arith.constant 0 : i32
    %c0_i32_1 = arith.constant 0 : i32
    return %c0_i32, %c0_i32_0 : i32, i32
  }
  func.func @transform_8(%arg0: i32) -> (i32, i32) {
    %c0_i32 = arith.constant 0 : i32
    %c0_i32_0 = arith.constant 0 : i32
    %c0_i32_1 = arith.constant 0 : i32
    return %c0_i32, %c0_i32_0 : i32, i32
  }
  func.func @transform_9(%arg0: i32) -> (i32, i32) {
    %c0_i32 = arith.constant 0 : i32
    %c0_i32_0 = arith.constant 0 : i32
    %c0_i32_1 = arith.constant 0 : i32
    return %c0_i32, %c0_i32_0 : i32, i32
  }
  func.func @transform_10(%arg0: i32) -> (i32, i32) {
    %c0_i32 = arith.constant 0 : i32
    %c0_i32_0 = arith.constant 0 : i32
    return %arg0, %c0_i32 : i32, i32
  }
}

</mosaic_0001>

<bundles_post_ra>
// kernel: encoder_forward.1
= control target key start
LH: loop header
LB: loop body
LE: loop exit
PB: predicated region body
PF: predicated region fallthrough
CT: control target
= control target key end

     0   :  { %s3469_s0 = inlined_call_operand.hbm [shape: f32[160,330], index: 0, kind: input, shape index: {}]   ;;  %s3470_s1 = inlined_call_operand.hbm [shape: f32[160,330], index: 1, kind: input, shape index: {}]   ;;  %s3471_s2 = inlined_call_operand.hbm [shape: bf16[330,128], index: 2, kind: input, shape index: {}]   ;;  %s3472_s3 = inlined_call_operand.vmem [shape: f32[1,128], index: 3, kind: input, shape index: {}]   ;;  %s3473_s4 = inlined_call_operand.hbm [shape: bf16[128,128], index: 4, kind: input, shape index: {}]   ;;  %s3474_s5 = inlined_call_operand.vmem [shape: f32[1,128], index: 5, kind: input, shape index: {}]   ;;  %s3475_s6 = inlined_call_operand.hbm [shape: bf16[128,128], index: 6, kind: input, shape index: {}]   ;;  %s3476_s7 = inlined_call_operand.vmem [shape: f32[1,128], index: 7, kind: input, shape index: {}]   ;;  %s3477_s8 = inlined_call_operand.hbm [shape: bf16[128,768], index: 8, kind: input, shape index: {}]   ;;  %s3478_s9 = inlined_call_operand.vmem [shape: f32[1,768], index: 9, kind: input, shape index: {}]   ;;  %s3479_s10 = inlined_call_operand.vmem [shape: f32[160,768], index: 10, kind: output, shape index: {}]  }
   0x1   :  { %3484 = sst [smem:[#allocation17_spill]] %s3469_s0 }
   0x2   :  { %3485 = sst [smem:[#allocation18_spill]] %s3471_s2 }
   0x3   :  { %3486 = sst [smem:[#allocation19_spill]] %s3478_s9 }
   0x4   :  { %3487 = sst [smem:[#allocation20_spill]] %s3479_s10 }
   0x5   :  { %15 = vsyncpa [#allocation3], 0 }
   0x6   :  { %17 = vsyncpa [#allocation3 + $0x1], 0 }
   0x7   :  { %18 = vsyncpa [#allocation5], 0 }
   0x8   :  { %20 = vsyncpa [#allocation5 + $0x1], 0 }
   0x9   :  { %21 = vsyncpa [#allocation8], 0 }
   0xa   :  { %22 = vsyncpa [#allocation11], 0  ;;  %s2865_s13 = smov 0   ;;  %s2867_s14 = smov 0  }
   0xb   :  { %s2869_s15 = smov 0   ;;  %s2871_s16 = smov 0  }
   0xc LB: > { %s2884_s17 = sadd.s32 4294967295, %s2795_s16   ;;  %p48_p0 = scmp.ne.s32.totalorder %s2787_s14, %s2783_s13  ;;  %s2795_s16 = sphi %s2871_s16, %s3510_s16   ;;  %s2791_s15 = sphi %s2869_s15, %s3509_s15   ;;  %s2787_s14 = sphi %s2867_s14, %s3508_s14   ;;  %s2783_s13 = sphi %s2865_s13, %s3507_s13  }
   0xd   : > { %p3480_p1 = scmp.eq.s32.totalorder %s2884_s17, 0  ;;  %p2055_p2 = scmp.ge.s32.totalorder %s2795_s16, 1 }
   0xe   : > { %p279_p3 = scmp.lt.s32.totalorder %s2795_s16, 3  ;;  %s2797_s20 = smov [#allocation6]  }
   0xf   : > { %p2892_p4 = por %p3480_p1, %p48_p0  ;;  %s291_s21 = sshll.u32 %s2797_s20, 4  ;;  %s292_s21 = int_to_ptr.vmem [resolvable:$true] %s291_s21 }
  0x10   : > { %p2896_p5 = pnand %p2055_p2, %p279_p3  ;;  %s2798_s23 = smov [#allocation7]  }
  0x11   : > { %s3488_s18 = scalar_select %p2892_p4, 1, 0 }
  0x12   : > { %s3489_s19 = scalar_select %p2896_p5, 1, 0 }
  0x13   : > { %p2390_p6 = pneg %p2896_p5  ;;  %s307_s24 = sshll.u32 %s2798_s23, 4  ;;  %s2908_s24 = int_to_ptr.vmem [resolvable:$true] %s307_s24 }
  0x14   : > { %s3491_s2 = sld [smem:[#allocation18_spill]] }
  0x15   : > { %p2904_p7 = pnand %p2390_p6, %p3480_p1 }
  0x17   : > { %p2918_p9 = pneg %p2904_p7 }
  0x1a   : > { %s2573_s27 = scalar_lea.hbm %s3491_s2, 2688 }
  0x1b   : > { %p2574_p8 = scmp.ne.s32.totalorder %s3491_s2, %s2573_s27  ;;  %p2580_p12 = scmp.lt.u32.totalorder %s2573_s27, %s3491_s2 }
  0x1d   : > { %p2576_p10 = pnand %p2918_p9, %p2574_p8 }
  0x1f   : > { %p2577_p11 = pneg %p2576_p10 }
  0x21   : > { %p2582_p13 = pnand %p2580_p12, %p2577_p11 }
  0x23   : > { %2585 = shalt.err (!%p2582_p13)
}
  0x24   : > { %s2586_s13 = scalar_lea.vmem %s292_s21, 2688  ;;  %p2594_p6 = scmp.lt.s32.totalorder %s292_s21, %s292_s21 }
  0x25   : > { %p2587_p0 = scmp.ne.s32.totalorder %s292_s21, %s2586_s13  ;;  %p2595_p1 = scmp.lt.s32.totalorder %s2586_s13, %s2586_s13 }
  0x27   : > { %p2589_p2 = pnand %p2587_p0, %p2918_p9  ;;  %p2596_p4 = por %p2595_p1, %p2594_p6 }
  0x29   : > { %p2590_p3 = pneg %p2589_p2 }
  0x2b   : > { %p2597_p5 = pnand %p2596_p4, %p2590_p3 }
  0x2d   : > { %2600 = shalt.err (!%p2597_p5)
}
  0x2e   : > { %s2799_s20 = smov 64   ;;  %s2800_s23 = smov 4  }
  0x2f   : > { %2393 = dma.hbm_to_vmem [thread:$0]  (!%p2904_p7), %s3491_s2, 2688, %s292_s21, [#allocation5], %s2799_s20, %s2799_s20, %s2800_s23  }
  0x30   : > { %s2601_s29 = scalar_lea.hbm %s3473_s4, 1024 }
  0x31   : > { %p2602_p1 = scmp.ne.s32.totalorder %s3473_s4, %s2601_s29  ;;  %p2608_p8 = scmp.lt.u32.totalorder %s2601_s29, %s3473_s4 }
  0x33   : > { %p2604_p4 = pnand %p2602_p1, %p2918_p9 }
  0x35   : > { %p2605_p5 = pneg %p2604_p4 }
  0x37   : > { %p2610_p10 = pnand %p2608_p8, %p2605_p5 }
  0x39   : > { %2613 = shalt.err (!%p2610_p10)
}
  0x3a   : > { %s2614_s21 = scalar_lea.vmem %s2908_s24, 1024  ;;  %p2622_p0 = scmp.lt.s32.totalorder %s2908_s24, %s2908_s24 }
  0x3b   : > { %p2615_p11 = scmp.ne.s32.totalorder %s2908_s24, %s2614_s21  ;;  %p2623_p2 = scmp.lt.s32.totalorder %s2614_s21, %s2614_s21 }
  0x3d   : > { %p2617_p12 = pnand %p2615_p11, %p2918_p9  ;;  %p2624_p3 = por %p2623_p2, %p2622_p0 }
  0x3f   : > { %p2618_p13 = pneg %p2617_p12 }
  0x41   : > { %p2625_p6 = pnand %p2624_p3, %p2618_p13 }
  0x43   : > { %2628 = shalt.err (!%p2625_p6)
}
  0x44   : > { %2396 = dma.hbm_to_vmem [thread:$0]  (!%p2904_p7), %s3473_s4, 1024, %s2908_s24, [#allocation8], %s2799_s20, %s2799_s20, %s2800_s23  }
  0x45   : > { %s2801_s26 = smov [#allocation9]   ;;  %s2802_s28 = smov [#allocation10]  }
  0x46   : > { %s323_s27 = sshll.u32 %s2801_s26, 4  ;;  %s339_s29 = sshll.u32 %s2802_s28, 4  ;;  %s324_s27 = int_to_ptr.vmem [resolvable:$true] %s323_s27  ;;  %s340_s29 = int_to_ptr.vmem [resolvable:$true] %s339_s29 }
  0x47   : > { %s2629_s13 = scalar_lea.hbm %s3475_s6, 1024 }
  0x48   : > { %p2630_p1 = scmp.ne.s32.totalorder %s3475_s6, %s2629_s13  ;;  %p2636_p8 = scmp.lt.u32.totalorder %s2629_s13, %s3475_s6 }
  0x4a   : > { %p2632_p4 = pnand %p2630_p1, %p2918_p9 }
  0x4c   : > { %p2633_p5 = pneg %p2632_p4 }
  0x4e   : > { %p2638_p10 = pnand %p2636_p8, %p2633_p5 }
  0x50   : > { %2641 = shalt.err (!%p2638_p10)
}
  0x51   : > { %s2642_s24 = scalar_lea.vmem %s324_s27, 1024  ;;  %p2650_p0 = scmp.lt.s32.totalorder %s324_s27, %s324_s27 }
  0x52   : > { %p2643_p11 = scmp.ne.s32.totalorder %s324_s27, %s2642_s24  ;;  %p2651_p2 = scmp.lt.s32.totalorder %s2642_s24, %s2642_s24 }
  0x54   : > { %p2645_p12 = pnand %p2643_p11, %p2918_p9  ;;  %p2652_p3 = por %p2651_p2, %p2650_p0 }
  0x56   : > { %p2646_p13 = pneg %p2645_p12 }
  0x58   : > { %p2653_p6 = pnand %p2652_p3, %p2646_p13 }
  0x5a   : > { %2656 = shalt.err (!%p2653_p6)
}
  0x5b   : > { %2399 = dma.hbm_to_vmem [thread:$0]  (!%p2904_p7), %s3475_s6, 1024, %s324_s27, [#allocation8], %s2799_s20, %s2799_s20, %s2800_s23  }
  0x5c   : > { %s2657_s28 = scalar_lea.hbm %s3477_s8, 6144 }
  0x5d   : > { %p2658_p1 = scmp.ne.s32.totalorder %s3477_s8, %s2657_s28  ;;  %p2664_p8 = scmp.lt.u32.totalorder %s2657_s28, %s3477_s8 }
  0x5f   : > { %p2660_p4 = pnand %p2658_p1, %p2918_p9 }
  0x61   : > { %p2661_p5 = pneg %p2660_p4 }
  0x63   : > { %p2666_p10 = pnand %p2664_p8, %p2661_p5 }
  0x65   : > { %2669 = shalt.err (!%p2666_p10)
}
  0x66   : > { %s2670_s10 = scalar_lea.vmem %s340_s29, 6144  ;;  %p2678_p0 = scmp.lt.s32.totalorder %s340_s29, %s340_s29 }
  0x67   : > { %p2671_p11 = scmp.ne.s32.totalorder %s340_s29, %s2670_s10  ;;  %p2679_p2 = scmp.lt.s32.totalorder %s2670_s10, %s2670_s10 }
  0x69   : > { %p2673_p12 = pnand %p2671_p11, %p2918_p9  ;;  %p2680_p3 = por %p2679_p2, %p2678_p0 }
  0x6b   : > { %p2674_p13 = pneg %p2673_p12 }
  0x6d   : > { %p2681_p6 = pnand %p2680_p3, %p2674_p13 }
  0x6f   : > { %2684 = shalt.err (!%p2681_p6)
}
  0x70   : > { %s2803_s20 = smov 384   ;;  %s2804_s30 = smov 24  }
  0x71   : > { %2402 = dma.hbm_to_vmem [thread:$0]  (!%p2904_p7), %s3477_s8, 6144, %s340_s29, [#allocation11], %s2803_s20, %s2803_s20, %s2804_s30  }
  0x72   : > { %s3006_s24 = sadd.s32 1, %s2795_s16   ;;  %s35_s9 = sadd.s32 1, %s2791_s15 }
  0x73   : > { %s32_s2 = ssub.s32 %s2795_s16, %s3006_s24  ;;  %p42_p1 = scmp.ne.s32.totalorder %s2791_s15, %s2787_s14 }
  0x74   : > { %p33_p9 = scmp.eq.s32.totalorder %s32_s2, 0  ;;  %p43_p4 = scmp.eq.s32.totalorder %s2795_s16, 0 }
  0x75   : > { %p2414_p5 = scmp.lt.s32.totalorder %s2795_s16, 2  ;;  %s356_s22 = sand.u32 1, %s2791_s15  }
  0x76   : > { %s3016_s25 = scalar_select %p33_p9, %s2791_s15, %s35_s9  }
  0x77   : > { %p44_p8 = por %p43_p4, %p42_p1  ;;  %s3019_s26 = smul.u32 240, %s356_s22 }
  0x78   : > { %s3483_s28 = smul.u32 3840, %s2795_s16  ;;  %s3494_s0 = sld [smem:[#allocation17_spill]] }
  0x79   : > { %p3022_p10 = pnand %p2414_p5, %p44_p8  ;;  %s360_s10 = scalar_lea.vmem [#allocation2], %s3019_s26 }
  0x7a   : > { %s368_s23 = sshll.u32 %s360_s10, 4  ;;  %s3037_s27 = scalar_lea.sflag [#allocation3], %s356_s22  ;;  %s3035_s23 = int_to_ptr.vmem [resolvable:$true] %s368_s23 }
  0x7b   : > { %p2687_p11 = pneg %p3022_p10 }
  0x7e   : > { %s3032_s21 = scalar_lea.hbm %s3494_s0, %s3483_s28  ;;  %s2690_s13 = scalar_lea.hbm %s3494_s0, 7680 }
  0x7f   : > { %s2685_s2 = scalar_lea.hbm %s3032_s21, 3840  ;;  %p2691_p0 = scmp.lt.u32.totalorder %s3032_s21, %s3494_s0 }
  0x80   : > { %p2686_p7 = scmp.ne.s32.totalorder %s3032_s21, %s2685_s2  ;;  %p2692_p2 = scmp.lt.u32.totalorder %s2690_s13, %s2685_s2 }
  0x81   : > { %p2694_p6 = scmp.lt.u32.totalorder %s2685_s2, %s3032_s21 }
  0x82   : > { %p2688_p12 = pnand %p2687_p11, %p2686_p7  ;;  %p2693_p3 = por %p2692_p2, %p2691_p0 }
  0x84   : > { %p2689_p13 = pneg %p2688_p12  ;;  %p2695_p9 = por %p2694_p6, %p2693_p3 }
  0x86   : > { %p2696_p1 = pnand %p2695_p9, %p2689_p13 }
  0x88   : > { %2699 = shalt.err (!%p2696_p1)
}
  0x89   : > { %s2700_s22 = scalar_lea.vmem %s3035_s23, 3840  ;;  %s2805_s10 = smov [#allocation2]  }
  0x8a   : > { %p2701_p4 = scmp.ne.s32.totalorder %s3035_s23, %s2700_s22  ;;  %s2705_s9 = sshll.u32 %s2805_s10, 4  ;;  %s2706_s9 = int_to_ptr.vmem [resolvable:$false] %s2705_s9 }
  0x8b   : > { %s2707_s28 = scalar_lea.vmem %s2706_s9, 7680  ;;  %p2708_p7 = scmp.lt.s32.totalorder %s3035_s23, %s2706_s9 }
  0x8c   : > { %p2703_p5 = pnand %p2701_p4, %p2687_p11  ;;  %p2709_p12 = scmp.lt.s32.totalorder %s2707_s28, %s2700_s22 }
  0x8e   : > { %p2704_p8 = pneg %p2703_p5  ;;  %p2710_p0 = por %p2709_p12, %p2708_p7 }
  0x90   : > { %p2711_p2 = pnand %p2710_p0, %p2704_p8 }
  0x92   : > { %2714 = shalt.err (!%p2711_p2)
}
  0x93   : > { %2406 = dma.hbm_to_vmem [thread:$0]  (!%p3022_p10), %s3032_s21, 3840, %s3035_s23, %s3037_s27, %s2803_s20, %s2803_s20, %s2804_s30  }
  0x94   : > { %s3495_s29 = smul.u32 3840, %s2795_s16  ;;  %s382_s22 = scalar_lea.vmem [#allocation4], %s3019_s26 }
  0x95   : > { %s390_s10 = sshll.u32 %s382_s22, 4  ;;  %s3496_s9 = sand.u32 1, %s2795_s16   ;;  %s3076_s10 = int_to_ptr.vmem [resolvable:$true] %s390_s10 }
  0x96   : > { %s3073_s13 = scalar_lea.hbm %s3470_s1, %s3495_s29  ;;  %s3080_s28 = scalar_lea.sflag [#allocation5], %s3496_s9 }
  0x97   : > { %s2715_s0 = scalar_lea.hbm %s3073_s13, 3840  ;;  %s2720_s27 = scalar_lea.hbm %s3470_s1, 7680 }
  0x98   : > { %p2716_p13 = scmp.ne.s32.totalorder %s3073_s13, %s2715_s0  ;;  %p2721_p9 = scmp.lt.u32.totalorder %s3073_s13, %s3470_s1 }
  0x99   : > { %p2722_p1 = scmp.lt.u32.totalorder %s2720_s27, %s2715_s0  ;;  %p2724_p5 = scmp.lt.u32.totalorder %s2715_s0, %s3073_s13 }
  0x9a   : > { %p2718_p3 = pnand %p2716_p13, %p2687_p11 }
  0x9b   : > { %p2723_p4 = por %p2722_p1, %p2721_p9 }
  0x9c   : > { %p2719_p6 = pneg %p2718_p3 }
  0x9d   : > { %p2725_p8 = por %p2724_p5, %p2723_p4 }
  0x9f   : > { %p2726_p7 = pnand %p2725_p8, %p2719_p6 }
  0xa1   : > { %2729 = shalt.err (!%p2726_p7)
}
  0xa2   : > { %s2730_s16 = scalar_lea.vmem %s3076_s10, 3840  ;;  %s2806_s26 = smov [#allocation4]  }
  0xa3   : > { %p2731_p12 = scmp.ne.s32.totalorder %s3076_s10, %s2730_s16  ;;  %s2735_s12 = sshll.u32 %s2806_s26, 4  ;;  %s2736_s12 = int_to_ptr.vmem [resolvable:$false] %s2735_s12 }
  0xa4   : > { %s2737_s22 = scalar_lea.vmem %s2736_s12, 7680  ;;  %p2738_p13 = scmp.lt.s32.totalorder %s3076_s10, %s2736_s12 }
  0xa5   : > { %p2733_p0 = pnand %p2731_p12, %p2687_p11  ;;  %p2739_p3 = scmp.lt.s32.totalorder %s2737_s22, %s2730_s16 }
  0xa7   : > { %p2734_p2 = pneg %p2733_p0  ;;  %p2740_p9 = por %p2739_p3, %p2738_p13 }
  0xa9   : > { %p2741_p1 = pnand %p2740_p9, %p2734_p2 }
  0xab   : > { %2744 = shalt.err (!%p2741_p1)
}
  0xac   : > { %2409 = dma.hbm_to_vmem [thread:$0]  (!%p3022_p10), %s3073_s13, 3840, %s3076_s10, %s3080_s28, %s2803_s20, %s2803_s20, %s2804_s30  }
  0xad   : > { %p3497_p11 = scmp.ne.s32.totalorder %s3489_s19, 0 }
  0xae   : > { %s404_s0 = sand.u32 (!%p3497_p11), 1, %s2787_s14   ;;  %p3498_p6 = scmp.ne.s32.totalorder (!%p3497_p11), %s3488_s18, 0 }
  0xaf   : > { %402 = sbr.rel (%p3497_p11) target bundleno = 1183 (0x49f), region = 60  ;;  %s405_s21 = scalar_lea.sflag (!%p3497_p11), [#allocation3], %s404_s0 }
  0xb0   : > { %s2368_s9 = smul.u32 (!%p3497_p11), 240, %s404_s0 }
  0xb2   : > { %s3112_s23 = scalar_lea.vmem (!%p3497_p11), [#allocation2], %s2368_s9 }
  0xb6   : > { %2762 = dma.done.wait (%p3498_p6), %s405_s21, 3840  }
  0xb7   : > { %2764 = vsyncadd (%p3498_p6), %s405_s21, 4294963456  ;;  %s413_s11 = sand.u32 1, %s2884_s17   ;;  %s3119_s20 = scalar_lea.vmem [#allocation4], %s2368_s9 }
  0xb8   : > { %s414_s27 = scalar_lea.sflag [#allocation5], %s413_s11 }
  0xb9   : > { %2766 = dma.done.wait (%p3498_p6), %s414_s27, 3840  }
  0xba   : > { %2768 = vsyncadd (%p3498_p6), %s414_s27, 4294963456  ;;  %p3499_p10 = scmp.eq.s32.totalorder %s2884_s17, 0 }
  0xbc   : > { %2770 = dma.done.wait (%p3499_p10), [#allocation5], 2688   ;;  %p3500_p4 = pmov %p3499_p10 }
  0xbe   : > { %2772 = vsyncadd (%p3500_p4), [#allocation5], 4294964608  ;;  %p3501_p5 = pmov %p3500_p4 }
  0xbf   : > { %p3502_p8 = pmov %p3500_p4 }
  0xc0   : > { %2774 = dma.done.wait (%p3501_p5), [#allocation8], 2048  }
  0xc1   : > { %2776 = vsyncadd (%p3502_p8), [#allocation8], 4294965248  ;;  %p3503_p7 = pmov %p3500_p4 }
  0xc2   : > { %p3504_p12 = pmov %p3500_p4 }
  0xc3   : > { %2778 = dma.done.wait (%p3503_p7), [#allocation11], 6144  }
  0xc4   : > { %2780 = vsyncadd (%p3504_p12), [#allocation11], 4294961152  ;;  %v2807_v0 = vmov 0.0   ;;  %vm2808_vm0 = vmmov 0   ;;  %v2464_v1 = vld [vmem:[#allocation6 + $0x40] sm:$0xff]   ;;  %v2466_v3 = vld [vmem:[#allocation6 + $0x48] sm:$0xff]  }
  0xc5   : > { %2246 = vmatprep.subr.bf16.mxu1 %v2807_v0  ;;  %2256 = vmatprep.mubr.msk.bf16.mxu1 %vm2808_vm0, %v2807_v0  ;;  %v2465_v2 = vld [vmem:[#allocation6] sm:$0xff]   ;;  %v2467_v4 = vld [vmem:[#allocation6 + $0x8] sm:$0xff]   ;;  %v2468_v5 = vld [vmem:[#allocation6 + $0x50] sm:$0xff]   ;;  %vm781_vm1 = vcmask 1044480   ;;  %vm765_vm2 = vcmask 605184   ;;  %s478_s29 = smul.u32 10, %s2884_s17 }
  0xc6   : > { %2164 = vmatprep.subr.bf16.mxu0 %v2464_v1  ;;  %v2469_v6 = vld [vmem:[#allocation6 + $0x10] sm:$0xff]   ;;  %v2470_v7 = vld [vmem:[#allocation6 + $0x58] sm:$0xff]   ;;  %v2472_v8 = vld [vmem:[#allocation6 + $0x80] sm:$0xff]   ;;  %s3505_s26 = sld [smem:[#allocation19_spill]]  ;;  %s3506_s0 = sld [smem:[#allocation20_spill]] }
  0xc7   : > { %2165 = vmatpush3.bf16.msra.mxu0 %v2465_v2  ;;  %v2471_v9 = vld [vmem:[#allocation6 + $0x18] sm:$0xff]   ;;  %2247 = vmatpush3.bf16.msra.mxu1 %v2472_v8  ;;  %v2475_v10 = vld [vmem:[#allocation6 + $0x88] sm:$0xff]   ;;  %v2473_v11 = vld [vmem:[#allocation6 + $0x60] sm:$0xff]   ;;  %p479_p0 = scmp.lt.s32.totalorder %s478_s29, 19 }
  0xc8   : > { %2166 = vmatprep.subr.bf16.mxu0 %v2466_v3  ;;  %2248 = vmatprep.subr.bf16.mxu1 %v2807_v0  ;;  %v2478_v12 = vld [vmem:[#allocation6 + $0x90] sm:$0xff]   ;;  %v2474_v13 = vld [vmem:[#allocation6 + $0x20] sm:$0xff]   ;;  %v2476_v14 = vld [vmem:[#allocation6 + $0x68] sm:$0xff]  }
  0xc9   : > { %v2477_v15 = vld [vmem:[#allocation6 + $0x28] sm:$0xff]   ;;  %v2481_v16 = vld [vmem:[#allocation6 + $0x98] sm:$0xff]   ;;  %v2479_v17 = vld [vmem:[#allocation6 + $0x70] sm:$0xff]   ;;  %s3512_s29 = smov (!%p479_p0, %s478_s29), 19 }
  0xca   : > { %v487_v18 = vld [vmem:[%s3112_s23 + $0x8] sm:$0xff]  ;;  %v490_v19 = vld [vmem:[%s3112_s23 + $0x20] sm:$0xff]  ;;  %v489_v28 = vld [vmem:[%s3112_s23 + $0x18] sm:$0xff]  ;;  %s2369_s12 = smul.u32 48, %s3512_s29 }
  0xcb   : > { %2167 = vmatpush3.bf16.msra.mxu0 %v2467_v4  ;;  %2249 = vmatpush3.bf16.msra.mxu1 %v2475_v10  ;;  %v517_v20 = vld [vmem:[%s3119_s20 + $0x8] sm:$0xff]  ;;  %v2480_v21 = vld [vmem:[#allocation6 + $0x30] sm:$0xff]   ;;  %v2484_v26 = vld [vmem:[#allocation6 + $0xa0] sm:$0x1f]  }
  0xcc   : > { %2168 = vmatprep.subr.bf16.mxu0 %v2468_v5  ;;  %2250 = vmatprep.subr.bf16.mxu1 %v2807_v0  ;;  %v520_v22 = vld [vmem:[%s3119_s20 + $0x20] sm:$0xff]  ;;  %v547_v23 = vadd.f32 %v517_v20, %v487_v18  ;;  %v2482_v24 = vld [vmem:[#allocation6 + $0x78] sm:$0xff]   ;;  %v488_v31 = vld [vmem:[%s3112_s23 + $0x10] sm:$0xff]  ;;  %v783_v33 = vsel %vm781_vm1, %v2484_v26, 0  ;;  %s3350_s9 = scalar_lea.vmem %s3506_s0, %s2369_s12 }
  0xcd   : > { %v550_v25 = vadd.f32 %v520_v22, %v490_v19  ;;  %v486_v27 = vld [vmem:[%s3112_s23] sm:$0xff]  ;;  %v519_v30 = vld [vmem:[%s3119_s20 + $0x18] sm:$0xff]  ;;  %v491_v34 = vld [vmem:[%s3112_s23 + $0x28] sm:$0xff] }
  0xce   : > { %v516_v29 = vld [vmem:[%s3119_s20] sm:$0xff]  ;;  %v518_v35 = vld [vmem:[%s3119_s20 + $0x10] sm:$0xff]  ;;  %v521_v36 = vld [vmem:[%s3119_s20 + $0x28] sm:$0xff]  ;;  %v549_v43 = vadd.f32 %v519_v30, %v489_v28 }
  0xcf   : > { %2169 = vmatpush3.bf16.msra.mxu0 %v2469_v6  ;;  %2251 = vmatpush3.bf16.msra.mxu1 %v2478_v12  ;;  %v577_v32 = vpack.c.bf16 %v550_v25, %v547_v23  ;;  %v548_v37 = vadd.f32 %v518_v35, %v488_v31  ;;  %v551_v38 = vadd.f32 %v521_v36, %v491_v34  ;;  %v493_v39 = vld [vmem:[%s3112_s23 + $0x38] sm:$0xff]  ;;  %v496_v40 = vld [vmem:[%s3112_s23 + $0x50] sm:$0xff]  ;;  %v494_v49 = vld [vmem:[%s3112_s23 + $0x40] sm:$0xff] }
  0xd0   : > { %2170 = vmatprep.subr.bf16.mxu0 %v2470_v7  ;;  %2252 = vmatprep.subr.bf16.mxu1 %v2807_v0  ;;  %v523_v41 = vld [vmem:[%s3119_s20 + $0x38] sm:$0xff]  ;;  %v546_v42 = vadd.f32 %v516_v29, %v486_v27  ;;  %v526_v44 = vld [vmem:[%s3119_s20 + $0x50] sm:$0xff]  ;;  %v524_v51 = vld [vmem:[%s3119_s20 + $0x40] sm:$0xff] }
  0xd1   : > { %817 = vmatprep.mubr.bf16.mxu0 %v577_v32  ;;  %v2483_v45 = vld [vmem:[#allocation6 + $0x38] sm:$0xff]   ;;  %v578_v46 = vpack.c.bf16 %v551_v38, %v548_v37  ;;  %v553_v47 = vadd.f32 %v523_v41, %v493_v39  ;;  %v556_v48 = vadd.f32 %v526_v44, %v496_v40  ;;  %v554_v53 = vadd.f32 %v524_v51, %v494_v49  ;;  %v492_v56 = vld [vmem:[%s3112_s23 + $0x30] sm:$0xff]  ;;  %v502_v62 = vld [vmem:[%s3112_s23 + $0x80] sm:$0xff] }
  0xd2   : > { %v497_v50 = vld [vmem:[%s3112_s23 + $0x58] sm:$0xff]  ;;  %v576_v55 = vpack.c.bf16 %v549_v43, %v546_v42  ;;  %v495_v57 = vld [vmem:[%s3112_s23 + $0x48] sm:$0xff]  ;;  %v522_v59 = vld [vmem:[%s3119_s20 + $0x30] sm:$0xff] }
  0xd3   : > { %2171 = vmatpush3.bf16.msra.mxu0 %v2471_v9  ;;  %2253 = vmatpush3.bf16.msra.mxu1 %v2481_v16  ;;  %v527_v52 = vld [vmem:[%s3119_s20 + $0x58] sm:$0xff]  ;;  %v580_v58 = vpack.c.bf16 %v556_v48, %v553_v47  ;;  %v525_v60 = vld [vmem:[%s3119_s20 + $0x48] sm:$0xff]  ;;  %v532_v1 = vld [vmem:[%s3119_s20 + $0x80] sm:$0xff]  ;;  %v552_v4 = vadd.f32 %v522_v59, %v492_v56 }
  0xd4   : > { %2172 = vmatprep.subr.bf16.mxu0 %v2473_v11  ;;  %2254 = vmatprep.subr.bf16.mxu1 %v2807_v0  ;;  %v557_v54 = vadd.f32 %v527_v52, %v497_v50  ;;  %v499_v61 = vld [vmem:[%s3112_s23 + $0x68] sm:$0xff]  ;;  %v500_v3 = vld [vmem:[%s3112_s23 + $0x70] sm:$0xff]  ;;  %v555_v5 = vadd.f32 %v525_v60, %v495_v57  ;;  %v562_v10 = vadd.f32 %v532_v1, %v502_v62  ;;  %v498_v11 = vld [vmem:[%s3112_s23 + $0x60] sm:$0xff] }
  0xd5   : > { %v529_v63 = vld [vmem:[%s3119_s20 + $0x68] sm:$0xff]  ;;  %v530_v7 = vld [vmem:[%s3119_s20 + $0x70] sm:$0xff]  ;;  %v501_v12 = vld [vmem:[%s3112_s23 + $0x78] sm:$0xff] }
  0xd6   : > { %v581_v2 = vpack.c.bf16 %v557_v54, %v554_v53  ;;  %v503_v6 = vld [vmem:[%s3112_s23 + $0x88] sm:$0xff]  ;;  %v559_v9 = vadd.f32 %v529_v63, %v499_v61  ;;  %v528_v16 = vld [vmem:[%s3119_s20 + $0x60] sm:$0xff]  ;;  %v505_v18 = vld [vmem:[%s3112_s23 + $0x98] sm:$0xff] }
  0xd7   : > { %2173 = vmatpush3.bf16.msra.mxu0 %v2474_v13  ;;  %2255 = vmatpush3.bf16.msra.mxu1 %v783_v33  ;;  %v533_v8 = vld [vmem:[%s3119_s20 + $0x88] sm:$0xff]  ;;  %v560_v13 = vadd.f32 %v530_v7, %v500_v3  ;;  %v508_v20 = vld [vmem:[%s3112_s23 + $0xb0] sm:$0xff]  ;;  %v506_v23 = vld [vmem:[%s3112_s23 + $0xa0] sm:$0xff]  ;;  %v558_v28 = vadd.f32 %v528_v16, %v498_v11 }
  0xd8   : > { %2174 = vmatprep.subr.bf16.mxu0 %v2476_v14  ;;  %2276 = vmatprep.subr.bf16.mxu1 %v2807_v0  ;;  %v563_v14 = vadd.f32 %v533_v8, %v503_v6  ;;  %v583_v19 = vpack.c.bf16 %v562_v10, %v559_v9  ;;  %v538_v22 = vld [vmem:[%s3119_s20 + $0xb0] sm:$0xff]  ;;  %v536_v25 = vld [vmem:[%s3119_s20 + $0xa0] sm:$0xff]  ;;  %v2485_v27 = vld [vmem:[#allocation7] sm:$0xff]  }
  0xd9   : > { %v539_v30 = vld [vmem:[%s3119_s20 + $0xb8] sm:$0xff]  ;;  %v568_v32 = vadd.f32 %v538_v22, %v508_v20  ;;  %v2486_v33 = vld [vmem:[#allocation7 + $0x8] sm:$0xff]   ;;  %v507_v35 = vld [vmem:[%s3112_s23 + $0xa8] sm:$0xff]  ;;  %v566_v38 = vadd.f32 %v536_v25, %v506_v23 }
  0xda   : > { %2257 = vmatmul.mubr.msk.bf16.vlgmr.msra.gmra.mrb[0].mxu1 %vm765_vm2, %v578_v46  ;;  %v584_v26 = vpack.c.bf16 %v563_v14, %v560_v13  ;;  %v504_v34 = vld [vmem:[%s3112_s23 + $0x90] sm:$0xff]  ;;  %v537_v37 = vld [vmem:[%s3119_s20 + $0xa8] sm:$0xff]  ;;  %v514_v43 = vld [vmem:[%s3112_s23 + $0xe0] sm:$0xff] }
  0xdb   : > { %2175 = vmatpush3.bf16.msra.mxu0 %v2477_v15  ;;  %2260 = vmatprep.mubr.msk.bf16.mxu1 %vm2808_vm0, %v2807_v0  ;;  %v579_v15 = vpack.c.bf16 %v555_v5, %v552_v4  ;;  %v534_v36 = vld [vmem:[%s3119_s20 + $0x90] sm:$0xff]  ;;  %v2487_v40 = vld [vmem:[#allocation7 + $0x10] sm:$0xff]   ;;  %v567_v54 = vadd.f32 %v537_v37, %v507_v35  ;;  %v510_v57 = vld [vmem:[%s3112_s23 + $0xc0] sm:$0xff] }
  0xdc   : > { %2176 = vmatprep.subr.bf16.mxu0 %v2479_v17  ;;  %v531_v17 = vld [vmem:[%s3119_s20 + $0x78] sm:$0xff]  ;;  %2277 = vmatpush3.bf16.msra.mxu1 %v2485_v27  ;;  %v511_v42 = vld [vmem:[%s3112_s23 + $0xc8] sm:$0xff]  ;;  %v512_v47 = vld [vmem:[%s3112_s23 + $0xd0] sm:$0xff]  ;;  %v564_v53 = vadd.f32 %v534_v36, %v504_v34 }
  0xdd   : > { %v561_v29 = vadd.f32 %v531_v17, %v501_v12  ;;  %2278 = vmatprep.subr.bf16.mxu1 %v2807_v0  ;;  %v541_v44 = vld [vmem:[%s3119_s20 + $0xc8] sm:$0xff]  ;;  %v542_v49 = vld [vmem:[%s3119_s20 + $0xd0] sm:$0xff]  ;;  %v540_v59 = vld [vmem:[%s3119_s20 + $0xc0] sm:$0xff] }
  0xde   : > { %v515_v48 = vld [vmem:[%s3112_s23 + $0xe8] sm:$0xff]  ;;  %v2488_v52 = vld [vmem:[#allocation7 + $0x18] sm:$0xff]   ;;  %v543_v60 = vld [vmem:[%s3119_s20 + $0xd8] sm:$0xff]  ;;  %v572_v61 = vadd.f32 %v542_v49, %v512_v47  ;;  %v585_v1 = vpack.c.bf16 %v567_v54, %v564_v53  ;;  %v570_v4 = vadd.f32 %v540_v59, %v510_v57 }
  0xdf   : > { %2177 = vmatpush3.bf16.msra.mxu0 %v2480_v21  ;;  %v535_v21 = vld [vmem:[%s3119_s20 + $0x98] sm:$0xff]  ;;  %v582_v41 = vpack.c.bf16 %v561_v29, %v558_v28  ;;  %v545_v50 = vld [vmem:[%s3119_s20 + $0xe8] sm:$0xff]  ;;  %v2490_v7 = vld [vmem:[#allocation7 + $0x28] sm:$0xff]  }
  0xe0   : > { %2178 = vmatprep.subr.bf16.mxu0 %v2482_v24  ;;  %v509_v24 = vld [vmem:[%s3112_s23 + $0xb8] sm:$0xff]  ;;  %v565_v31 = vadd.f32 %v535_v21, %v505_v18  ;;  %2279 = vmatpush3.bf16.msra.mxu1 %v2486_v33  ;;  %v575_v62 = vadd.f32 %v545_v50, %v515_v48  ;;  %v2492_v9 = vld [vmem:[#allocation7 + $0x38] sm:$0xff]   ;;  %v2494_v11 = vld [vmem:[#allocation9 + $0x8] sm:$0xff]  }
  0xe1   : > { %v569_v39 = vadd.f32 %v539_v30, %v509_v24  ;;  %2280 = vmatprep.subr.bf16.mxu1 %v2807_v0  ;;  %v2489_v63 = vld [vmem:[#allocation7 + $0x20] sm:$0xff]   ;;  %v2491_v8 = vld [vmem:[#allocation7 + $0x30] sm:$0xff]   ;;  %v2496_v13 = vld [vmem:[#allocation9 + $0x18] sm:$0xff]  }
  0xe2   : > { %2261 = vmatmul.mubr.msk.bf16.gmra.mrb[4].mxu1 %vm765_vm2, %v581_v2  ;;  %v586_v46 = vpack.c.bf16 %v568_v32, %v565_v31  ;;  %v590_v3 = vpack.c.bf16 %v575_v62, %v572_v61  ;;  %v2493_v10 = vld [vmem:[#allocation9] sm:$0xff]   ;;  %v2495_v12 = vld [vmem:[#allocation9 + $0x10] sm:$0xff]   ;;  %v3239_v22 = vld [vmem:[%s3472_s3] ss:$0 sm:$0xff] }
  0xe3   : > { %2179 = vmatpush3.bf16.msra.mxu0 %v2483_v45  ;;  %2264 = vmatprep.mubr.msk.bf16.mxu1 %vm2808_vm0, %v2807_v0  ;;  %v544_v45 = vld [vmem:[%s3119_s20 + $0xe0] sm:$0xff]  ;;  %v587_v51 = vpack.c.bf16 %v569_v39, %v566_v38  ;;  %v2497_v14 = vld [vmem:[#allocation9 + $0x20] sm:$0xff]  }
  0xe4   : > { %2312 = vmatprep.subr.bf16.mxu0 %v2807_v0  ;;  %v574_v56 = vadd.f32 %v544_v45, %v514_v43  ;;  %2281 = vmatpush3.bf16.msra.mxu1 %v2487_v40 }
  0xe5   : > { %2282 = vmatprep.subr.bf16.mxu1 %v2807_v0 }
  0xe6   : > { %818 = vmatmul.mubr.bf16.vlgmr.msra.gmra.mrb[0].mxu0 %v576_v55  ;;  %v571_v55 = vadd.f32 %v541_v44, %v511_v42 }
  0xe7   : > { %825 = vmatprep.mubr.bf16.mxu0 %v580_v58  ;;  %v513_v58 = vld [vmem:[%s3112_s23 + $0xd8] sm:$0xff]  ;;  %2313 = vmatpush3.bf16.msra.mxu0 %v2493_v10 }
  0xe8   : > { %v589_v2 = vpack.c.bf16 %v574_v56, %v571_v55  ;;  %2283 = vmatpush3.bf16.msra.mxu1 %v2488_v52  ;;  %v573_v5 = vadd.f32 %v543_v60, %v513_v58  ;;  %2314 = vmatprep.subr.bf16.mxu0 %v2807_v0 }
  0xe9   : > { %2284 = vmatprep.subr.bf16.mxu1 %v2807_v0 }
  0xea   : > { %2265 = vmatmul.mubr.msk.bf16.gmra.mrb[8].mxu1 %vm765_vm2, %v584_v26  ;;  %v588_v6 = vpack.c.bf16 %v573_v5, %v570_v4 }
  0xeb   : > { %2268 = vmatprep.mubr.msk.bf16.mxu1 %vm2808_vm0, %v2807_v0  ;;  %2315 = vmatpush3.bf16.msra.mxu0 %v2494_v11 }
  0xec   : > { %2285 = vmatpush3.bf16.msra.mxu1 %v2489_v63  ;;  %2316 = vmatprep.subr.bf16.mxu0 %v2807_v0 }
  0xed   : > { %2286 = vmatprep.subr.bf16.mxu1 %v2807_v0 }
  0xee   : > { %826 = vmatmul.mubr.bf16.gmra.mrb[4].mxu0 %v579_v15  ;;  %v2498_v15 = vld [vmem:[#allocation9 + $0x28] sm:$0xff]  }
  0xef   : > { %833 = vmatprep.mubr.bf16.mxu0 %v583_v19  ;;  %2317 = vmatpush3.bf16.msra.mxu0 %v2495_v12 }
  0xf0   : > { %2287 = vmatpush3.bf16.msra.mxu1 %v2490_v7  ;;  %2318 = vmatprep.subr.bf16.mxu0 %v2807_v0 }
  0xf1   : > { %2288 = vmatprep.subr.bf16.mxu1 %v2807_v0 }
  0xf2   : > { %2269 = vmatmul.mubr.msk.bf16.gmra.mrb[12].mxu1 %vm765_vm2, %v587_v51 }
  0xf3   : > { %2272 = vmatprep.mubr.msk.bf16.mxu1 %vm2808_vm0, %v2807_v0  ;;  %2319 = vmatpush3.bf16.msra.mxu0 %v2496_v13 }
  0xf4   : > { %2289 = vmatpush3.bf16.msra.mxu1 %v2491_v8  ;;  %2320 = vmatprep.subr.bf16.mxu0 %v2807_v0 }
  0xf5   : > { %2290 = vmatprep.subr.bf16.mxu1 %v2807_v0 }
  0xf6   : > { %834 = vmatmul.mubr.bf16.gmra.mrb[8].mxu0 %v582_v41 }
  0xf7   : > { %841 = vmatprep.mubr.bf16.mxu0 %v586_v46  ;;  %2321 = vmatpush3.bf16.msra.mxu0 %v2497_v14 }
  0xf8   : > { %2291 = vmatpush3.bf16.msra.mxu1 %v2492_v9  ;;  %2322 = vmatprep.subr.bf16.mxu0 %v2807_v0 }
  0xfa   : > { %2273 = vmatmul.mubr.msk.bf16.gmra.mrb[16].mxu1 %vm765_vm2, %v590_v3 }
  0xfb   : > { %2292 = vmatprep.mubr.msk.bf16.mxu1 %vm2808_vm0, %v2807_v0  ;;  %2323 = vmatpush3.bf16.msra.mxu0 %v2498_v15 }
  0xfc   : > { %2324 = vmatprep.subr.bf16.mxu0 %v2807_v0 }
  0xfe   : > { %842 = vmatmul.mubr.bf16.gmra.mrb[12].mxu0 %v585_v1 }
  0xff   : > { %849 = vmatprep.mubr.bf16.mxu0 %v589_v2 }
 0x106   : > { %850 = vmatmul.mubr.bf16.gmra.mrb[16].mxu0 %v588_v6 }
 0x107   : > { %2328 = vmatprep.mubr.msk.bf16.mxu0 %vm2808_vm0, %v2807_v0 }
 0x1ad   : > { %v892_v16 = vpop.f32.mrb[0].mxu1 }
 0x1ae   : > { %v2258_v17 = vpop.f32.mrb[1].mxu1 }
 0x1af   : > { %v895_v18 = vpop.f32.mrb[2].mxu1 }
 0x1b0   : > { %v2259_v19 = vpop.f32.mrb[3].mxu1 }
 0x1b5   : > { %v900_v26 = vpop.f32.mrb[4].mxu1 }
 0x1b6   : > { %v2262_v29 = vpop.f32.mrb[5].mxu1 }
 0x1b7   : > { %v903_v30 = vpop.f32.mrb[6].mxu1 }
 0x1b8   : > { %v2263_v33 = vpop.f32.mrb[7].mxu1 }
 0x1b9   : > { %v2180_v20 = vpop.f32.mrb[0].mxu0 }
 0x1ba   : > { %v2181_v21 = vpop.f32.mrb[1].mxu0 }
 0x1bb   : > { %v2182_v23 = vadd.f32 %v2181_v21, %v2180_v20  ;;  %v2183_v24 = vpop.f32.mrb[2].mxu0 }
 0x1bc   : > { %v2184_v25 = vpop.f32.mrb[3].mxu0 }
 0x1bd   : > { %v820_v27 = vadd.f32 %v2182_v23, %v3239_v22  ;;  %v2185_v28 = vadd.f32 %v2184_v25, %v2183_v24  ;;  %v908_v42 = vpop.f32.mrb[8].mxu1 }
 0x1be   : > { %v2266_v47 = vpop.f32.mrb[9].mxu1 }
 0x1bf   : > { %v893_v31 = vadd.f32 %v892_v16, %v820_v27  ;;  %v823_v32 = vadd.f32 %v2185_v28, %v3239_v22  ;;  %v911_v48 = vpop.f32.mrb[10].mxu1 }
 0x1c0   : > { %v2267_v52 = vpop.f32.mrb[11].mxu1 }
 0x1c1   : > { %v931_v34 = vmul.f32 0.2, %v893_v31  ;;  %v896_v35 = vadd.f32 %v895_v18, %v823_v32  ;;  %v2186_v36 = vpop.f32.mrb[4].mxu0  ;;  %v2501_v52 = vld [vmem:[#allocation10] ss:$24 sps:$4 sm:$0xff]  }
 0x1c2   : > { %v2187_v37 = vpop.f32.mrb[5].mxu0 }
 0x1c3   : > { %v932_v38 = vmul.f32 0.2, %v896_v35  ;;  %v2188_v39 = vadd.f32 %v2187_v37, %v2186_v36  ;;  %v2189_v40 = vpop.f32.mrb[6].mxu0  ;;  %v941_v43 = vmax.f32 %v893_v31, %v931_v34 }
 0x1c4   : > { %v2190_v41 = vpop.f32.mrb[7].mxu0 }
 0x1c5   : > { %v942_v44 = vmax.f32 %v896_v35, %v932_v38  ;;  %v828_v45 = vadd.f32 %v2188_v39, %v3239_v22  ;;  %v2191_v46 = vadd.f32 %v2190_v41, %v2189_v40  ;;  %v916_v61 = vpop.f32.mrb[12].mxu1 }
 0x1c6   : > { %v2270_v3 = vpop.f32.mrb[13].mxu1 }
 0x1c7   : > { %v951_v49 = vpack.c.bf16 %v942_v44, %v941_v43  ;;  %v901_v50 = vadd.f32 %v900_v26, %v828_v45  ;;  %v831_v51 = vadd.f32 %v2191_v46, %v3239_v22  ;;  %v919_v4 = vpop.f32.mrb[14].mxu1 }
 0x1c8   : > { %v2271_v8 = vpop.f32.mrb[15].mxu1 }
 0x1c9   : > { %v933_v53 = vmul.f32 0.2, %v901_v50  ;;  %v904_v54 = vadd.f32 %v903_v30, %v831_v51  ;;  %v2192_v55 = vpop.f32.mrb[8].mxu0  ;;  %2293 = vmatmul.mubr.bf16.vlgmr.msra.gmra.mrb[20].mxu1 %v951_v49  ;;  %v2500_v51 = vld [vmem:[#allocation9 + $0x38] sm:$0xff]  }
 0x1ca   : > { %v2193_v56 = vpop.f32.mrb[9].mxu0  ;;  %2296 = vmatprep.mubr.msk.bf16.mxu1 %vm2808_vm0, %v2807_v0 }
 0x1cb   : > { %v934_v57 = vmul.f32 0.2, %v904_v54  ;;  %v2194_v58 = vadd.f32 %v2193_v56, %v2192_v55  ;;  %v2195_v59 = vpop.f32.mrb[10].mxu0  ;;  %v943_v62 = vmax.f32 %v901_v50, %v933_v53  ;;  %v2499_v50 = vld [vmem:[#allocation9 + $0x30] sm:$0xff]   ;;  %v2512_v56 = vld [vmem:[#allocation10 + $0x64] ss:$24 sps:$4 sm:$0xff]  }
 0x1cc   : > { %v2196_v60 = vpop.f32.mrb[11].mxu0  ;;  %2325 = vmatpush3.bf16.msra.mxu0 %v2499_v50  ;;  %v2506_v53 = vld [vmem:[#allocation10 + $0x34] ss:$24 sps:$4 sm:$0xff]   ;;  %v2504_v55 = vld [vmem:[#allocation10 + $0x30] ss:$24 sps:$4 sm:$0xff]  }
 0x1cd   : > { %v944_v63 = vmax.f32 %v904_v54, %v934_v57  ;;  %v836_v1 = vadd.f32 %v2194_v58, %v3239_v22  ;;  %v2197_v2 = vadd.f32 %v2196_v60, %v2195_v59  ;;  %v924_v17 = vpop.f32.mrb[16].mxu1  ;;  %2326 = vmatprep.subr.bf16.mxu0 %v2807_v0  ;;  %v2509_v54 = vld [vmem:[#allocation10 + $0xc] ss:$24 sps:$4 sm:$0xff]   ;;  %v2510_v57 = vld [vmem:[#allocation10 + $0x60] ss:$24 sps:$4 sm:$0xff]  }
 0x1ce   : > { %v2274_v23 = vpop.f32.mrb[17].mxu1  ;;  %v2518_v58 = vld [vmem:[#allocation10 + $0x94] ss:$24 sps:$4 sm:$0xff]   ;;  %v2516_v59 = vld [vmem:[#allocation10 + $0x90] ss:$24 sps:$4 sm:$0xff]  }
 0x1cf   : > { %v909_v5 = vadd.f32 %v908_v42, %v836_v1  ;;  %v839_v6 = vadd.f32 %v2197_v2, %v3239_v22  ;;  %v952_v7 = vpack.c.bf16 %v944_v63, %v943_v62  ;;  %v927_v24 = vpop.f32.mrb[18].mxu1  ;;  %v2524_v60 = vld [vmem:[#allocation10 + $0xc4] ss:$24 sps:$4 sm:$0xff]   ;;  %v2530_v62 = vld [vmem:[#allocation10 + $0xf4] ss:$24 sps:$4 sm:$0xff]  }
 0x1d0   : > { %v2275_v28 = vpop.f32.mrb[19].mxu1  ;;  %2327 = vmatpush3.bf16.msra.mxu0 %v2500_v51  ;;  %v2528_v63 = vld [vmem:[#allocation10 + $0xf0] ss:$24 sps:$4 sm:$0xff]   ;;  %v3263_v1 = vld [vmem:[%s3474_s5] ss:$0 sm:$0xff] }
 0x1d1   : > { %v935_v9 = vmul.f32 0.2, %v909_v5  ;;  %v912_v10 = vadd.f32 %v911_v48, %v839_v6  ;;  %v2198_v11 = vpop.f32.mrb[12].mxu0  ;;  %2297 = vmatmul.mubr.bf16.gmra.mrb[24].mxu1 %v952_v7  ;;  %1697 = vmatprep.subr.bf16.mxu0 %v2509_v54  ;;  %v2513_v23 = vld [vmem:[#allocation10 + $0x38] ss:$24 sps:$4 sm:$0xff]  }
 0x1d2   : > { %v2199_v12 = vpop.f32.mrb[13].mxu0  ;;  %2300 = vmatprep.mubr.msk.bf16.mxu1 %vm2808_vm0, %v2807_v0 }
 0x1d3   : > { %v936_v13 = vmul.f32 0.2, %v912_v10  ;;  %v2200_v14 = vadd.f32 %v2199_v12, %v2198_v11  ;;  %v2201_v15 = vpop.f32.mrb[14].mxu0  ;;  %v945_v18 = vmax.f32 %v909_v5, %v935_v9 }
 0x1d4   : > { %v2202_v16 = vpop.f32.mrb[15].mxu0 }
 0x1d5   : > { %v946_v19 = vmax.f32 %v912_v10, %v936_v13  ;;  %v844_v20 = vadd.f32 %v2200_v14, %v3239_v22  ;;  %v2203_v21 = vadd.f32 %v2202_v16, %v2201_v15  ;;  %v2507_v13 = vld [vmem:[#allocation10 + $0x8] ss:$24 sps:$4 sm:$0xff]  }
 0x1d7   : > { %v917_v25 = vadd.f32 %v916_v61, %v844_v20  ;;  %v847_v26 = vadd.f32 %v2203_v21, %v3239_v22  ;;  %v953_v27 = vpack.c.bf16 %v946_v19, %v945_v18  ;;  %v2522_v61 = vld [vmem:[#allocation10 + $0xc0] ss:$24 sps:$4 sm:$0xff]  }
 0x1d9   : > { %v937_v29 = vmul.f32 0.2, %v917_v25  ;;  %v920_v30 = vadd.f32 %v919_v4, %v847_v26  ;;  %v2204_v31 = vpop.f32.mrb[16].mxu0  ;;  %2301 = vmatmul.mubr.bf16.gmra.mrb[28].mxu1 %v953_v27 }
 0x1da   : > { %v2205_v32 = vpop.f32.mrb[17].mxu0  ;;  %2304 = vmatprep.mubr.msk.bf16.mxu1 %vm2808_vm0, %v2807_v0 }
 0x1db   : > { %v938_v33 = vmul.f32 0.2, %v920_v30  ;;  %v2206_v34 = vadd.f32 %v2205_v32, %v2204_v31  ;;  %v2207_v35 = vpop.f32.mrb[18].mxu0  ;;  %v947_v37 = vmax.f32 %v917_v25, %v937_v29  ;;  %v2521_v25 = vld [vmem:[#allocation10 + $0x6c] ss:$24 sps:$4 sm:$0xff]  }
 0x1dc   : > { %v2208_v36 = vpop.f32.mrb[19].mxu0  ;;  %v2519_v29 = vld [vmem:[#allocation10 + $0x68] ss:$24 sps:$4 sm:$0xff]  }
 0x1dd   : > { %v948_v38 = vmax.f32 %v920_v30, %v938_v33  ;;  %v852_v39 = vadd.f32 %v2206_v34, %v3239_v22  ;;  %v2209_v40 = vadd.f32 %v2208_v36, %v2207_v35  ;;  %v2527_v33 = vld [vmem:[#allocation10 + $0x9c] ss:$24 sps:$4 sm:$0xff]  }
 0x1df   : > { %v925_v41 = vadd.f32 %v924_v17, %v852_v39  ;;  %v855_v42 = vadd.f32 %v2209_v40, %v3239_v22  ;;  %v954_v43 = vpack.c.bf16 %v948_v38, %v947_v37  ;;  %v2503_v22 = vld [vmem:[#allocation10 + $0x4] ss:$24 sps:$4 sm:$0xff]   ;;  %v2525_v38 = vld [vmem:[#allocation10 + $0x98] ss:$24 sps:$4 sm:$0xff]  }
 0x1e0   : > { %1614 = vmatprep.subr.bf16.mxu1 %v2503_v22  ;;  %v2515_v17 = vld [vmem:[#allocation10 + $0x3c] ss:$24 sps:$4 sm:$0xff]   ;;  %v2533_v40 = vld [vmem:[#allocation10 + $0xcc] ss:$24 sps:$4 sm:$0xff]   ;;  %v2534_v22 = vld [vmem:[#allocation10 + $0xf8] ss:$24 sps:$4 sm:$0xff]  }
 0x1e1   : > { %v939_v44 = vmul.f32 0.2, %v925_v41  ;;  %v928_v45 = vadd.f32 %v927_v24, %v855_v42  ;;  %2305 = vmatmul.mubr.bf16.gmra.mrb[32].mxu1 %v954_v43 }
 0x1e2   : > { %2308 = vmatprep.mubr.msk.bf16.mxu1 %vm2808_vm0, %v2807_v0  ;;  %1615 = vmatpush1.bf16.msra.mxu1 %v2501_v52 }
 0x1e3   : > { %v940_v46 = vmul.f32 0.2, %v928_v45  ;;  %v949_v47 = vmax.f32 %v925_v41, %v939_v44  ;;  %1616 = vmatprep.subr.bf16.mxu1 %v2506_v53  ;;  %v2531_v44 = vld [vmem:[#allocation10 + $0xc8] ss:$24 sps:$4 sm:$0xff]  }
 0x1e5   : > { %v950_v48 = vmax.f32 %v928_v45, %v940_v46 }
 0x1e6   : > { %1617 = vmatpush1.bf16.msra.mxu1 %v2504_v55 }
 0x1e7   : > { %v955_v49 = vpack.c.bf16 %v950_v48, %v949_v47  ;;  %1618 = vmatprep.subr.bf16.mxu1 %v2512_v56  ;;  %v2536_v48 = vld [vmem:[#allocation10 + $0xfc] ss:$24 sps:$4 sm:$0xff]  }
 0x1e9   : > { %2309 = vmatmul.mubr.bf16.gmra.mrb[36].mxu1 %v955_v49 }
 0x1ea   : > { %1619 = vmatpush1.bf16.msra.mxu1 %v2510_v57 }
 0x1eb   : > { %1620 = vmatprep.subr.bf16.mxu1 %v2518_v58 }
 0x1ee   : > { %1621 = vmatpush1.bf16.msra.mxu1 %v2516_v59 }
 0x1ef   : > { %1622 = vmatprep.subr.bf16.mxu1 %v2524_v60 }
 0x1f2   : > { %1623 = vmatpush1.bf16.msra.mxu1 %v2522_v61 }
 0x1f3   : > { %1624 = vmatprep.subr.bf16.mxu1 %v2530_v62 }
 0x1f6   : > { %1625 = vmatpush1.bf16.msra.mxu1 %v2528_v63 }
 0x29c   : > { %v1061_v2 = vpop.f32.mrb[20].mxu1 }
 0x29d   : > { %v1062_v3 = vadd.f32 %v3263_v1, %v1061_v2  ;;  %v2294_v4 = vpop.f32.mrb[21].mxu1 }
 0x29e   : > { %v1064_v5 = vpop.f32.mrb[22].mxu1 }
 0x29f   : > { %v1100_v6 = vmul.f32 0.2, %v1062_v3  ;;  %v1065_v7 = vadd.f32 %v3263_v1, %v1064_v5  ;;  %v2295_v8 = vpop.f32.mrb[23].mxu1 }
 0x2a0   : > { %v2537_v8 = vld [vmem:[#allocation10 + $0x120] ss:$24 sps:$4 sm:$0xff]  }
 0x2a1   : > { %v1101_v9 = vmul.f32 0.2, %v1065_v7  ;;  %v1110_v10 = vmax.f32 %v1062_v3, %v1100_v6  ;;  %v2539_v6 = vld [vmem:[#allocation10 + $0x124] ss:$24 sps:$4 sm:$0xff]  }
 0x2a2   : > { %1626 = vmatprep.subr.bf16.mxu1 %v2539_v6 }
 0x2a3   : > { %v1111_v11 = vmax.f32 %v1065_v7, %v1101_v9  ;;  %v2542_v7 = vld [vmem:[#allocation10 + $0x12c] ss:$24 sps:$4 sm:$0xff]   ;;  %v2540_v9 = vld [vmem:[#allocation10 + $0x128] ss:$24 sps:$4 sm:$0xff]   ;;  %1627 = vmatpush1.bf16.msra.mxu1 %v2537_v8 }
 0x2a4   : > { %v1069_v12 = vpop.f32.mrb[24].mxu1 }
 0x2a5   : > { %v1120_v14 = vpack.c.bf16 %v1111_v11, %v1110_v10  ;;  %v1070_v15 = vadd.f32 %v3263_v1, %v1069_v12  ;;  %v2298_v16 = vpop.f32.mrb[25].mxu1  ;;  %v2545_v10 = vld [vmem:[#allocation10 + $0x154] ss:$24 sps:$4 sm:$0xff]   ;;  %v2543_v11 = vld [vmem:[#allocation10 + $0x150] ss:$24 sps:$4 sm:$0xff]  }
 0x2a6   : > { %v1072_v18 = vpop.f32.mrb[26].mxu1  ;;  %v2546_v12 = vld [vmem:[#allocation10 + $0x158] ss:$24 sps:$4 sm:$0xff]   ;;  %1628 = vmatprep.subr.bf16.mxu1 %v2545_v10 }
 0x2a7   : > { %v1102_v19 = vmul.f32 0.2, %v1070_v15  ;;  %v1073_v20 = vadd.f32 %v3263_v1, %v1072_v18  ;;  %v2299_v21 = vpop.f32.mrb[27].mxu1  ;;  %2329 = vmatmul.mubr.bf16.vlgmr.msra.gmra.mrb[20].mxu0 %v1120_v14  ;;  %1629 = vmatpush1.bf16.msra.mxu1 %v2543_v11  ;;  %v3288_v14 = vld [vmem:[%s3476_s7] ss:$0 sm:$0xff] }
 0x2a8   : > { %2332 = vmatprep.mubr.msk.bf16.mxu0 %vm2808_vm0, %v2807_v0  ;;  %1698 = vmatpush1.bf16.msra.mxu0 %v2507_v13  ;;  %v2551_v13 = vld [vmem:[#allocation10 + $0x14] ss:$24 sps:$4 sm:$0xff]  }
 0x2a9   : > { %v1103_v24 = vmul.f32 0.2, %v1073_v20  ;;  %1699 = vmatprep.subr.bf16.mxu0 %v2515_v17  ;;  %v1112_v26 = vmax.f32 %v1070_v15, %v1102_v19  ;;  %2348 = vmatprep.subr.bf16.mxu1 %v2551_v13 }
 0x2ab   : > { %v1113_v27 = vmax.f32 %v1073_v20, %v1103_v24 }
 0x2ac   : > { %v1077_v28 = vpop.f32.mrb[28].mxu1  ;;  %1700 = vmatpush1.bf16.msra.mxu0 %v2513_v23 }
 0x2ad   : > { %v1078_v30 = vadd.f32 %v3263_v1, %v1077_v28  ;;  %v2302_v31 = vpop.f32.mrb[29].mxu1  ;;  %v1121_v32 = vpack.c.bf16 %v1113_v27, %v1112_v26  ;;  %1701 = vmatprep.subr.bf16.mxu0 %v2521_v25  ;;  %v2549_v27 = vld [vmem:[#allocation10 + $0x10] ss:$24 sps:$4 sm:$0xff]  }
 0x2ae   : > { %v1080_v34 = vpop.f32.mrb[30].mxu1  ;;  %v2554_v31 = vld [vmem:[#allocation10 + $0x44] ss:$24 sps:$4 sm:$0xff]  }
 0x2af   : > { %v1104_v35 = vmul.f32 0.2, %v1078_v30  ;;  %v1081_v36 = vadd.f32 %v3263_v1, %v1080_v34  ;;  %v2303_v37 = vpop.f32.mrb[31].mxu1  ;;  %2333 = vmatmul.mubr.bf16.gmra.mrb[24].mxu0 %v1121_v32 }
 0x2b0   : > { %2336 = vmatprep.mubr.msk.bf16.mxu0 %vm2808_vm0, %v2807_v0  ;;  %1702 = vmatpush1.bf16.msra.mxu0 %v2519_v29 }
 0x2b1   : > { %v1105_v39 = vmul.f32 0.2, %v1081_v36  ;;  %1703 = vmatprep.subr.bf16.mxu0 %v2527_v33  ;;  %v1114_v41 = vmax.f32 %v1078_v30, %v1104_v35 }
 0x2b3   : > { %v1115_v42 = vmax.f32 %v1081_v36, %v1105_v39  ;;  %v2552_v36 = vld [vmem:[#allocation10 + $0x40] ss:$24 sps:$4 sm:$0xff]  }
 0x2b4   : > { %v1085_v43 = vpop.f32.mrb[32].mxu1  ;;  %1704 = vmatpush1.bf16.msra.mxu0 %v2525_v38  ;;  %v2557_v38 = vld [vmem:[#allocation10 + $0x74] ss:$24 sps:$4 sm:$0xff]  }
 0x2b5   : > { %v1086_v45 = vadd.f32 %v3263_v1, %v1085_v43  ;;  %v2306_v46 = vpop.f32.mrb[33].mxu1  ;;  %v1122_v47 = vpack.c.bf16 %v1115_v42, %v1114_v41  ;;  %1705 = vmatprep.subr.bf16.mxu0 %v2533_v40  ;;  %v2555_v42 = vld [vmem:[#allocation10 + $0x70] ss:$24 sps:$4 sm:$0xff]  }
 0x2b6   : > { %v1088_v49 = vpop.f32.mrb[34].mxu1  ;;  %v2560_v46 = vld [vmem:[#allocation10 + $0xa4] ss:$24 sps:$4 sm:$0xff]  }
 0x2b7   : > { %v1106_v50 = vmul.f32 0.2, %v1086_v45  ;;  %v1089_v51 = vadd.f32 %v3263_v1, %v1088_v49  ;;  %v2307_v52 = vpop.f32.mrb[35].mxu1  ;;  %2337 = vmatmul.mubr.bf16.gmra.mrb[28].mxu0 %v1122_v47 }
 0x2b8   : > { %2340 = vmatprep.mubr.msk.bf16.mxu0 %vm2808_vm0, %v2807_v0  ;;  %1706 = vmatpush1.bf16.msra.mxu0 %v2531_v44 }
 0x2b9   : > { %v1107_v53 = vmul.f32 0.2, %v1089_v51  ;;  %1707 = vmatprep.subr.bf16.mxu0 %v2536_v48  ;;  %v1116_v54 = vmax.f32 %v1086_v45, %v1106_v50 }
 0x2bb   : > { %v1117_v55 = vmax.f32 %v1089_v51, %v1107_v53  ;;  %v2558_v51 = vld [vmem:[#allocation10 + $0xa0] ss:$24 sps:$4 sm:$0xff]  }
 0x2bc   : > { %v1093_v56 = vpop.f32.mrb[36].mxu1  ;;  %1708 = vmatpush1.bf16.msra.mxu0 %v2534_v22  ;;  %v2563_v22 = vld [vmem:[#allocation10 + $0xd4] ss:$24 sps:$4 sm:$0xff]  }
 0x2bd   : > { %v1094_v57 = vadd.f32 %v3263_v1, %v1093_v56  ;;  %v2310_v58 = vpop.f32.mrb[37].mxu1  ;;  %v1123_v59 = vpack.c.bf16 %v1117_v55, %v1116_v54  ;;  %1709 = vmatprep.subr.bf16.mxu0 %v2542_v7  ;;  %v2561_v56 = vld [vmem:[#allocation10 + $0xd0] ss:$24 sps:$4 sm:$0xff]  }
 0x2be   : > { %v1096_v60 = vpop.f32.mrb[38].mxu1 }
 0x2bf   : > { %v1108_v61 = vmul.f32 0.2, %v1094_v57  ;;  %v1097_v62 = vadd.f32 %v3263_v1, %v1096_v60  ;;  %v2311_v63 = vpop.f32.mrb[39].mxu1  ;;  %2341 = vmatmul.mubr.bf16.gmra.mrb[32].mxu0 %v1123_v59  ;;  %v2548_v1 = vld [vmem:[#allocation10 + $0x15c] ss:$24 sps:$4 sm:$0xff]  }
 0x2c0   : > { %2344 = vmatprep.mubr.msk.bf16.mxu0 %vm2808_vm0, %v2807_v0  ;;  %1710 = vmatpush1.bf16.msra.mxu0 %v2540_v9  ;;  %v2809_v0 = vmov 0   ;;  %v2567_v9 = vld [vmem:[#allocation10 + $0x130] ss:$24 sps:$4 sm:$0xff]  }
 0x2c1   : > { %v1109_v2 = vmul.f32 0.2, %v1097_v62  ;;  %v1118_v3 = vmax.f32 %v1094_v57, %v1108_v61  ;;  %1711 = vmatprep.subr.bf16.mxu0 %v2548_v1  ;;  %1646 = vmatprep.mubr.bf16.mxu1 %v2809_v0  ;;  %v2566_v61 = vld [vmem:[#allocation10 + $0x104] ss:$24 sps:$4 sm:$0xff]  }
 0x2c3   : > { %v1119_v4 = vmax.f32 %v1097_v62, %v1109_v2 }
 0x2c4   : > { %1712 = vmatpush1.bf16.msra.mxu0 %v2546_v12 }
 0x2c5   : > { %v1124_v5 = vpack.c.bf16 %v1119_v4, %v1118_v3  ;;  %1780 = vmatprep.subr.bf16.mxu0 %v2551_v13  ;;  %v2564_v3 = vld [vmem:[#allocation10 + $0x100] ss:$24 sps:$4 sm:$0xff]   ;;  %v2572_v13 = vld [vmem:[#allocation10 + $0x164] ss:$24 sps:$4 sm:$0xff]  }
 0x2c7   : > { %2345 = vmatmul.mubr.bf16.gmra.mrb[36].mxu0 %v1124_v5  ;;  %v2569_v5 = vld [vmem:[#allocation10 + $0x134] ss:$24 sps:$4 sm:$0xff]  }
 0x2c8   : > { %1729 = vmatprep.mubr.bf16.mxu0 %v2809_v0 }
 0x37a   : > { %v1230_v15 = vpop.f32.mrb[20].mxu0 }
 0x37b   : > { %v1231_v16 = vadd.f32 %v3288_v14, %v1230_v15  ;;  %v2330_v17 = vpop.f32.mrb[21].mxu0 }
 0x37c   : > { %v1233_v18 = vpop.f32.mrb[22].mxu0 }
 0x37d   : > { %v1269_v19 = vmul.f32 0.2, %v1231_v16  ;;  %v1234_v20 = vadd.f32 %v3288_v14, %v1233_v18  ;;  %v2331_v21 = vpop.f32.mrb[23].mxu0  ;;  %v2570_v18 = vld [vmem:[#allocation10 + $0x160] ss:$24 sps:$4 sm:$0xff]  }
 0x37f   : > { %v1270_v23 = vmul.f32 0.2, %v1234_v20  ;;  %v1279_v24 = vmax.f32 %v1231_v16, %v1269_v19 }
 0x381   : > { %v1280_v25 = vmax.f32 %v1234_v20, %v1270_v23 }
 0x382   : > { %v1238_v26 = vpop.f32.mrb[24].mxu0 }
 0x383   : > { %v3292_v28 = vpack.c.bf16 %v1280_v25, %v1279_v24  ;;  %v1239_v29 = vadd.f32 %v3288_v14, %v1238_v26  ;;  %v2334_v30 = vpop.f32.mrb[25].mxu0 }
 0x384   : > { %v1241_v32 = vpop.f32.mrb[26].mxu0 }
 0x385   : > { %v1271_v33 = vmul.f32 0.2, %v1239_v29  ;;  %v1242_v34 = vadd.f32 %v3288_v14, %v1241_v32  ;;  %v2335_v35 = vpop.f32.mrb[27].mxu0  ;;  %1647 = vmatmul.mubr.bf16.vlgmr.msra.gmra.mrb[40].mxu1 %v3292_v28  ;;  %1730 = vmatmul.mubr.bf16.vlgmr.msra.gmra.mrb[40].mxu0 %v3292_v28 }
 0x386   : > { %2356 = vmatpush1.bf16.msra.mxu1 %v2549_v27  ;;  %1656 = vmatprep.mubr.bf16.mxu1 %v2809_v0 }
 0x387   : > { %v1272_v37 = vmul.f32 0.2, %v1242_v34  ;;  %2349 = vmatprep.subr.bf16.mxu1 %v2554_v31  ;;  %1739 = vmatprep.mubr.bf16.mxu0 %v2809_v0  ;;  %v1281_v39 = vmax.f32 %v1239_v29, %v1271_v33 }
 0x388   : > { %1781 = vmatpush1.bf16.msra.mxu0 %v2549_v27  ;;  %v3331_v27 = vld [vmem:[%s3505_s26] sm:$0x3f] }
 0x389   : > { %v1282_v40 = vmax.f32 %v1242_v34, %v1272_v37  ;;  %1782 = vmatprep.subr.bf16.mxu0 %v2554_v31 }
 0x38a   : > { %v1246_v41 = vpop.f32.mrb[28].mxu0  ;;  %2357 = vmatpush1.bf16.msra.mxu1 %v2552_v36 }
 0x38b   : > { %v1247_v43 = vadd.f32 %v3288_v14, %v1246_v41  ;;  %v2338_v44 = vpop.f32.mrb[29].mxu0  ;;  %v3301_v45 = vpack.c.bf16 %v1282_v40, %v1281_v39  ;;  %2350 = vmatprep.subr.bf16.mxu1 %v2557_v38 }
 0x38c   : > { %v1249_v47 = vpop.f32.mrb[30].mxu0  ;;  %1783 = vmatpush1.bf16.msra.mxu0 %v2552_v36 }
 0x38d   : > { %v1273_v48 = vmul.f32 0.2, %v1247_v43  ;;  %v1250_v49 = vadd.f32 %v3288_v14, %v1249_v47  ;;  %v2339_v50 = vpop.f32.mrb[31].mxu0  ;;  %1657 = vmatmul.mubr.bf16.gmra.mrb[44].mxu1 %v3301_v45  ;;  %1740 = vmatmul.mubr.bf16.gmra.mrb[44].mxu0 %v3301_v45 }
 0x38e   : > { %2358 = vmatpush1.bf16.msra.mxu1 %v2555_v42  ;;  %1666 = vmatprep.mubr.bf16.mxu1 %v2809_v0 }
 0x38f   : > { %v1274_v52 = vmul.f32 0.2, %v1250_v49  ;;  %2351 = vmatprep.subr.bf16.mxu1 %v2560_v46  ;;  %1749 = vmatprep.mubr.bf16.mxu0 %v2809_v0  ;;  %v1283_v53 = vmax.f32 %v1247_v43, %v1273_v48 }
 0x390   : > { %1784 = vmatprep.subr.bf16.mxu0 %v2557_v38 }
 0x391   : > { %v1284_v54 = vmax.f32 %v1250_v49, %v1274_v52  ;;  %1785 = vmatpush1.bf16.msra.mxu0 %v2555_v42 }
 0x392   : > { %v1254_v55 = vpop.f32.mrb[32].mxu0  ;;  %2359 = vmatpush1.bf16.msra.mxu1 %v2558_v51  ;;  %1786 = vmatprep.subr.bf16.mxu0 %v2560_v46 }
 0x393   : > { %v1255_v57 = vadd.f32 %v3288_v14, %v1254_v55  ;;  %v2342_v58 = vpop.f32.mrb[33].mxu0  ;;  %v1291_v59 = vpack.c.bf16 %v1284_v54, %v1283_v53  ;;  %2352 = vmatprep.subr.bf16.mxu1 %v2563_v22 }
 0x394   : > { %v1257_v60 = vpop.f32.mrb[34].mxu0 }
 0x395   : > { %v1275_v62 = vmul.f32 0.2, %v1255_v57  ;;  %v1258_v63 = vadd.f32 %v3288_v14, %v1257_v60  ;;  %v2343_v2 = vpop.f32.mrb[35].mxu0  ;;  %1667 = vmatmul.mubr.bf16.gmra.mrb[48].mxu1 %v1291_v59  ;;  %1750 = vmatmul.mubr.bf16.gmra.mrb[48].mxu0 %v1291_v59 }
 0x396   : > { %2360 = vmatpush1.bf16.msra.mxu1 %v2561_v56  ;;  %1787 = vmatpush1.bf16.msra.mxu0 %v2558_v51 }
 0x397   : > { %v1276_v4 = vmul.f32 0.2, %v1258_v63  ;;  %1676 = vmatprep.mubr.bf16.mxu1 %v2809_v0  ;;  %1759 = vmatprep.mubr.bf16.mxu0 %v2809_v0  ;;  %v1285_v6 = vmax.f32 %v1255_v57, %v1275_v62 }
 0x398   : > { %1788 = vmatprep.subr.bf16.mxu0 %v2563_v22  ;;  %2353 = vmatprep.subr.bf16.mxu1 %v2566_v61 }
 0x399   : > { %v1286_v7 = vmax.f32 %v1258_v63, %v1276_v4 }
 0x39a   : > { %v1262_v8 = vpop.f32.mrb[36].mxu0  ;;  %1789 = vmatpush1.bf16.msra.mxu0 %v2561_v56  ;;  %2361 = vmatpush1.bf16.msra.mxu1 %v2564_v3 }
 0x39b   : > { %v1263_v10 = vadd.f32 %v3288_v14, %v1262_v8  ;;  %v2346_v1 = vpop.f32.mrb[37].mxu0  ;;  %v1292_v11 = vpack.c.bf16 %v1286_v7, %v1285_v6  ;;  %1790 = vmatprep.subr.bf16.mxu0 %v2566_v61  ;;  %2354 = vmatprep.subr.bf16.mxu1 %v2569_v5 }
 0x39c   : > { %v1265_v12 = vpop.f32.mrb[38].mxu0 }
 0x39d   : > { %v1277_v15 = vmul.f32 0.2, %v1263_v10  ;;  %v1266_v16 = vadd.f32 %v3288_v14, %v1265_v12  ;;  %v2347_v17 = vpop.f32.mrb[39].mxu0  ;;  %1677 = vmatmul.mubr.bf16.gmra.mrb[52].mxu1 %v1292_v11  ;;  %1760 = vmatmul.mubr.bf16.gmra.mrb[52].mxu0 %v1292_v11  ;;  %v1344_v14 = vlaneseq }
 0x39e   : > { %1791 = vmatpush1.bf16.msra.mxu0 %v2564_v3  ;;  %2362 = vmatpush1.bf16.msra.mxu1 %v2567_v9 }
 0x39f   : > { %v1278_v19 = vmul.f32 0.2, %v1266_v16  ;;  %1686 = vmatprep.mubr.bf16.mxu1 %v2809_v0  ;;  %1769 = vmatprep.mubr.bf16.mxu0 %v2809_v0  ;;  %v1287_v20 = vmax.f32 %v1263_v10, %v1277_v15  ;;  %v3324_v24 = vshrl.u32 %v1344_v14, 7 }
 0x3a0   : > { %1792 = vmatprep.subr.bf16.mxu0 %v2569_v5  ;;  %2355 = vmatprep.subr.bf16.mxu1 %v2572_v13 }
 0x3a1   : > { %v1288_v21 = vmax.f32 %v1266_v16, %v1278_v19  ;;  %v1346_v25 = vsub.s32 0, %v3324_v24  ;;  %v1354_v26 = vsub.s32 2, %v3324_v24 }
 0x3a2   : > { %1793 = vmatpush1.bf16.msra.mxu0 %v2567_v9  ;;  %2363 = vmatpush1.bf16.msra.mxu1 %v2570_v18 }
 0x3a3   : > { %v1293_v23 = vpack.c.bf16 %v1288_v21, %v1287_v20  ;;  %1794 = vmatprep.subr.bf16.mxu0 %v2572_v13  ;;  %v3336_v29 = vrot.slane %v3331_v27, %v1346_v25  ;;  %v3339_v30 = vrot.slane %v3331_v27, %v1354_v26 }
 0x3a5   : > { %1687 = vmatmul.mubr.bf16.gmra.mrb[56].mxu1 %v1293_v23  ;;  %1770 = vmatmul.mubr.bf16.gmra.mrb[56].mxu0 %v1293_v23 }
 0x3a6   : > { %1795 = vmatpush1.bf16.msra.mxu0 %v2570_v18  ;;  %1812 = vmatprep.mubr.bf16.mxu0 %v2809_v0 }
 0x3a7   : > { %1822 = vmatprep.mubr.bf16.mxu1 %v2809_v0 }
 0x3ad   : > { %1813 = vmatmul.mubr.bf16.vlgmr.msra.gmra.mrb[60].mxu0 %v3292_v28  ;;  %1823 = vmatmul.mubr.bf16.vlgmr.msra.gmra.mrb[60].mxu1 %v3301_v45  ;;  %v1350_v28 = vsub.s32 1, %v3324_v24 }
 0x3ae   : > { %1832 = vmatprep.mubr.bf16.mxu1 %v2809_v0 }
 0x3af   : > { %v3342_v31 = vrot.slane %v3331_v27, %v1350_v28 }
 0x3b5   : > { %1833 = vmatmul.mubr.bf16.gmra.mrb[64].mxu1 %v1291_v59 }
 0x3b6   : > { %1842 = vmatprep.mubr.bf16.mxu1 %v2809_v0 }
 0x3bd   : > { %1843 = vmatmul.mubr.bf16.gmra.mrb[68].mxu1 %v1292_v11 }
 0x3be   : > { %1852 = vmatprep.mubr.bf16.mxu1 %v2809_v0  ;;  %v1358_v0 = vsub.s32 3, %v3324_v24 }
 0x3c0   : > { %v3345_v32 = vrot.slane %v3331_v27, %v1358_v0 }
 0x3c5   : > { %1853 = vmatmul.mubr.bf16.gmra.mrb[72].mxu1 %v1293_v23 }
 0x458   : > { %v1648_v33 = vpop.f32.mrb[40].mxu1  ;;  %v1731_v34 = vpop.f32.mrb[40].mxu0 }
 0x459   : > { %v1649_v35 = vadd.f32 %v1648_v33, %v3336_v29  ;;  %v1732_v36 = vadd.f32 %v1731_v34, %v3339_v30  ;;  %v1650_v37 = vpop.f32.mrb[41].mxu1  ;;  %v1733_v38 = vpop.f32.mrb[41].mxu0 }
 0x45a   : > { %v1651_v39 = vadd.f32 %v1650_v37, %v3342_v31  ;;  %v1734_v40 = vadd.f32 %v1733_v38, %v3345_v32  ;;  %v1652_v41 = vpop.f32.mrb[42].mxu1  ;;  %v1735_v42 = vpop.f32.mrb[42].mxu0 }
 0x45b   : > { %1863 = vst [vmem:[%s3350_s9] sm:$0xff] %v1649_v35  ;;  %1865 = vst [vmem:[%s3350_s9 + $0x10] sm:$0xff] %v1732_v36  ;;  %v1653_v43 = vadd.f32 %v1652_v41, %v3336_v29  ;;  %v1736_v44 = vadd.f32 %v1735_v42, %v3339_v30  ;;  %v1654_v45 = vpop.f32.mrb[43].mxu1  ;;  %v1737_v46 = vpop.f32.mrb[43].mxu0 }
 0x45c   : > { %1864 = vst [vmem:[%s3350_s9 + $0x8] sm:$0xff] %v1651_v39  ;;  %1866 = vst [vmem:[%s3350_s9 + $0x18] sm:$0xff] %v1734_v40  ;;  %v1655_v47 = vadd.f32 %v1654_v45, %v3342_v31  ;;  %v1738_v48 = vadd.f32 %v1737_v46, %v3345_v32  ;;  %v1362_v45 = vsub.s32 4, %v3324_v24 }
 0x45d   : > { %1869 = vst [vmem:[%s3350_s9 + $0x30] sm:$0xff] %v1653_v43  ;;  %1871 = vst [vmem:[%s3350_s9 + $0x40] sm:$0xff] %v1736_v44 }
 0x45e   : > { %1870 = vst [vmem:[%s3350_s9 + $0x38] sm:$0xff] %v1655_v47  ;;  %1872 = vst [vmem:[%s3350_s9 + $0x48] sm:$0xff] %v1738_v48 }
 0x460   : > { %v1658_v49 = vpop.f32.mrb[44].mxu1  ;;  %v1741_v50 = vpop.f32.mrb[44].mxu0 }
 0x461   : > { %v1659_v51 = vadd.f32 %v1658_v49, %v3336_v29  ;;  %v1742_v52 = vadd.f32 %v1741_v50, %v3339_v30  ;;  %v1660_v22 = vpop.f32.mrb[45].mxu1  ;;  %v1743_v53 = vpop.f32.mrb[45].mxu0  ;;  %v1366_v50 = vsub.s32 5, %v3324_v24  ;;  %v1363_v24 = vrot.slane %v3331_v27, %v1362_v45 }
 0x462   : > { %v1661_v54 = vadd.f32 %v1660_v22, %v3342_v31  ;;  %v1744_v55 = vadd.f32 %v1743_v53, %v3345_v32  ;;  %v1662_v56 = vpop.f32.mrb[46].mxu1  ;;  %v1745_v57 = vpop.f32.mrb[46].mxu0 }
 0x463   : > { %1875 = vst [vmem:[%s3350_s9 + $0x60] sm:$0xff] %v1659_v51  ;;  %1877 = vst [vmem:[%s3350_s9 + $0x70] sm:$0xff] %v1742_v52  ;;  %v1663_v58 = vadd.f32 %v1662_v56, %v3336_v29  ;;  %v1746_v59 = vadd.f32 %v1745_v57, %v3339_v30  ;;  %v1664_v60 = vpop.f32.mrb[47].mxu1  ;;  %v1747_v61 = vpop.f32.mrb[47].mxu0 }
 0x464   : > { %1876 = vst [vmem:[%s3350_s9 + $0x68] sm:$0xff] %v1661_v54  ;;  %1878 = vst [vmem:[%s3350_s9 + $0x78] sm:$0xff] %v1744_v55  ;;  %v1665_v62 = vadd.f32 %v1664_v60, %v3342_v31  ;;  %v1748_v63 = vadd.f32 %v1747_v61, %v3345_v32 }
 0x465   : > { %1881 = vst [vmem:[%s3350_s9 + $0x90] sm:$0xff] %v1663_v58  ;;  %1883 = vst [vmem:[%s3350_s9 + $0xa0] sm:$0xff] %v1746_v59 }
 0x466   : > { %1882 = vst [vmem:[%s3350_s9 + $0x98] sm:$0xff] %v1665_v62  ;;  %1884 = vst [vmem:[%s3350_s9 + $0xa8] sm:$0xff] %v1748_v63 }
 0x468   : > { %v1668_v2 = vpop.f32.mrb[48].mxu1  ;;  %v1751_v3 = vpop.f32.mrb[48].mxu0 }
 0x469   : > { %v1669_v4 = vadd.f32 %v1668_v2, %v3336_v29  ;;  %v1752_v5 = vadd.f32 %v1751_v3, %v3339_v30  ;;  %v1670_v6 = vpop.f32.mrb[49].mxu1  ;;  %v1753_v7 = vpop.f32.mrb[49].mxu0 }
 0x46a   : > { %v1671_v8 = vadd.f32 %v1670_v6, %v3342_v31  ;;  %v1754_v9 = vadd.f32 %v1753_v7, %v3345_v32  ;;  %v1672_v10 = vpop.f32.mrb[50].mxu1  ;;  %v1755_v1 = vpop.f32.mrb[50].mxu0 }
 0x46b   : > { %1887 = vst [vmem:[%s3350_s9 + $0xc0] sm:$0xff] %v1669_v4  ;;  %1889 = vst [vmem:[%s3350_s9 + $0xd0] sm:$0xff] %v1752_v5  ;;  %v1673_v11 = vadd.f32 %v1672_v10, %v3336_v29  ;;  %v1756_v12 = vadd.f32 %v1755_v1, %v3339_v30  ;;  %v1674_v13 = vpop.f32.mrb[51].mxu1  ;;  %v1757_v15 = vpop.f32.mrb[51].mxu0 }
 0x46c   : > { %1888 = vst [vmem:[%s3350_s9 + $0xc8] sm:$0xff] %v1671_v8  ;;  %1890 = vst [vmem:[%s3350_s9 + $0xd8] sm:$0xff] %v1754_v9  ;;  %v1675_v16 = vadd.f32 %v1674_v13, %v3342_v31  ;;  %v1758_v17 = vadd.f32 %v1757_v15, %v3345_v32 }
 0x46d   : > { %1893 = vst [vmem:[%s3350_s9 + $0xf0] sm:$0xff] %v1673_v11  ;;  %1895 = vst [vmem:[%s3350_s9 + $0x100] sm:$0xff] %v1756_v12 }
 0x46e   : > { %1894 = vst [vmem:[%s3350_s9 + $0xf8] sm:$0xff] %v1675_v16  ;;  %1896 = vst [vmem:[%s3350_s9 + $0x108] sm:$0xff] %v1758_v17 }
 0x470   : > { %v1678_v18 = vpop.f32.mrb[52].mxu1  ;;  %v1761_v19 = vpop.f32.mrb[52].mxu0 }
 0x471   : > { %v1679_v20 = vadd.f32 %v1678_v18, %v3336_v29  ;;  %v1762_v21 = vadd.f32 %v1761_v19, %v3339_v30  ;;  %v1680_v23 = vpop.f32.mrb[53].mxu1  ;;  %v1763_v14 = vpop.f32.mrb[53].mxu0 }
 0x472   : > { %v1681_v25 = vadd.f32 %v1680_v23, %v3342_v31  ;;  %v1764_v26 = vadd.f32 %v1763_v14, %v3345_v32  ;;  %v1682_v28 = vpop.f32.mrb[54].mxu1  ;;  %v1765_v0 = vpop.f32.mrb[54].mxu0 }
 0x473   : > { %1899 = vst [vmem:[%s3350_s9 + $0x120] sm:$0xff] %v1679_v20  ;;  %1901 = vst [vmem:[%s3350_s9 + $0x130] sm:$0xff] %v1762_v21  ;;  %v1683_v33 = vadd.f32 %v1682_v28, %v3336_v29  ;;  %v1766_v34 = vadd.f32 %v1765_v0, %v3339_v30  ;;  %v1684_v35 = vpop.f32.mrb[55].mxu1  ;;  %v1767_v36 = vpop.f32.mrb[55].mxu0 }
 0x474   : > { %1900 = vst [vmem:[%s3350_s9 + $0x128] sm:$0xff] %v1681_v25  ;;  %1902 = vst [vmem:[%s3350_s9 + $0x138] sm:$0xff] %v1764_v26  ;;  %v1685_v37 = vadd.f32 %v1684_v35, %v3342_v31  ;;  %v1768_v38 = vadd.f32 %v1767_v36, %v3345_v32 }
 0x475   : > { %1905 = vst [vmem:[%s3350_s9 + $0x150] sm:$0xff] %v1683_v33  ;;  %1907 = vst [vmem:[%s3350_s9 + $0x160] sm:$0xff] %v1766_v34 }
 0x476   : > { %1906 = vst [vmem:[%s3350_s9 + $0x158] sm:$0xff] %v1685_v37  ;;  %1908 = vst [vmem:[%s3350_s9 + $0x168] sm:$0xff] %v1768_v38 }
 0x478   : > { %v1688_v39 = vpop.f32.mrb[56].mxu1  ;;  %v1771_v40 = vpop.f32.mrb[56].mxu0 }
 0x479   : > { %v1689_v41 = vadd.f32 %v1688_v39, %v3336_v29  ;;  %v1772_v42 = vadd.f32 %v1771_v40, %v3339_v30  ;;  %v1690_v43 = vpop.f32.mrb[57].mxu1  ;;  %v1773_v44 = vpop.f32.mrb[57].mxu0 }
 0x47a   : > { %v1691_v46 = vadd.f32 %v1690_v43, %v3342_v31  ;;  %v1774_v47 = vadd.f32 %v1773_v44, %v3345_v32  ;;  %v1692_v48 = vpop.f32.mrb[58].mxu1  ;;  %v1775_v49 = vpop.f32.mrb[58].mxu0 }
 0x47b   : > { %1911 = vst [vmem:[%s3350_s9 + $0x180] sm:$0xff] %v1689_v41  ;;  %1913 = vst [vmem:[%s3350_s9 + $0x190] sm:$0xff] %v1772_v42  ;;  %v1693_v51 = vadd.f32 %v1692_v48, %v3336_v29  ;;  %v1776_v52 = vadd.f32 %v1775_v49, %v3339_v30  ;;  %v1694_v22 = vpop.f32.mrb[59].mxu1  ;;  %v1777_v53 = vpop.f32.mrb[59].mxu0  ;;  %v1367_v29 = vrot.slane %v3331_v27, %v1366_v50 }
 0x47c   : > { %1912 = vst [vmem:[%s3350_s9 + $0x188] sm:$0xff] %v1691_v46  ;;  %1914 = vst [vmem:[%s3350_s9 + $0x198] sm:$0xff] %v1774_v47  ;;  %v1695_v54 = vadd.f32 %v1694_v22, %v3342_v31  ;;  %v1778_v55 = vadd.f32 %v1777_v53, %v3345_v32 }
 0x47d   : > { %1917 = vst [vmem:[%s3350_s9 + $0x1b0] sm:$0xff] %v1693_v51  ;;  %1919 = vst [vmem:[%s3350_s9 + $0x1c0] sm:$0xff] %v1776_v52 }
 0x47e   : > { %1918 = vst [vmem:[%s3350_s9 + $0x1b8] sm:$0xff] %v1695_v54  ;;  %1920 = vst [vmem:[%s3350_s9 + $0x1c8] sm:$0xff] %v1778_v55 }
 0x480   : > { %v1814_v56 = vpop.f32.mrb[60].mxu0  ;;  %v1824_v30 = vpop.f32.mrb[60].mxu1 }
 0x481   : > { %v1815_v57 = vadd.f32 %v1814_v56, %v1363_v24  ;;  %v1825_v58 = vadd.f32 %v1824_v30, %v1363_v24  ;;  %v1816_v59 = vpop.f32.mrb[61].mxu0  ;;  %v1826_v31 = vpop.f32.mrb[61].mxu1 }
 0x482   : > { %v1817_v32 = vadd.f32 %v1816_v59, %v1367_v29  ;;  %v1827_v60 = vadd.f32 %v1826_v31, %v1367_v29  ;;  %v1818_v61 = vpop.f32.mrb[62].mxu0  ;;  %v1828_v62 = vpop.f32.mrb[62].mxu1 }
 0x483   : > { %1867 = vst [vmem:[%s3350_s9 + $0x20] sm:$0xff] %v1815_v57  ;;  %1879 = vst [vmem:[%s3350_s9 + $0x80] sm:$0xff] %v1825_v58  ;;  %v1819_v63 = vadd.f32 %v1818_v61, %v1363_v24  ;;  %v1829_v27 = vadd.f32 %v1828_v62, %v1363_v24  ;;  %v1820_v2 = vpop.f32.mrb[63].mxu0  ;;  %v1830_v3 = vpop.f32.mrb[63].mxu1 }
 0x484   : > { %1868 = vst [vmem:[%s3350_s9 + $0x28] sm:$0xff] %v1817_v32  ;;  %1880 = vst [vmem:[%s3350_s9 + $0x88] sm:$0xff] %v1827_v60  ;;  %v1821_v4 = vadd.f32 %v1820_v2, %v1367_v29  ;;  %v1831_v5 = vadd.f32 %v1830_v3, %v1367_v29 }
 0x485   : > { %1873 = vst [vmem:[%s3350_s9 + $0x50] sm:$0xff] %v1819_v63  ;;  %1885 = vst [vmem:[%s3350_s9 + $0xb0] sm:$0xff] %v1829_v27 }
 0x486   : > { %1874 = vst [vmem:[%s3350_s9 + $0x58] sm:$0xff] %v1821_v4  ;;  %1886 = vst [vmem:[%s3350_s9 + $0xb8] sm:$0xff] %v1831_v5 }
 0x488   : > { %v1834_v6 = vpop.f32.mrb[64].mxu1 }
 0x489   : > { %v1835_v7 = vadd.f32 %v1834_v6, %v1363_v24  ;;  %v1836_v8 = vpop.f32.mrb[65].mxu1 }
 0x48a   : > { %v1837_v9 = vadd.f32 %v1836_v8, %v1367_v29  ;;  %v1838_v10 = vpop.f32.mrb[66].mxu1 }
 0x48b   : > { %1891 = vst [vmem:[%s3350_s9 + $0xe0] sm:$0xff] %v1835_v7  ;;  %v1839_v1 = vadd.f32 %v1838_v10, %v1363_v24  ;;  %v1840_v11 = vpop.f32.mrb[67].mxu1 }
 0x48c   : > { %1892 = vst [vmem:[%s3350_s9 + $0xe8] sm:$0xff] %v1837_v9  ;;  %v1841_v12 = vadd.f32 %v1840_v11, %v1367_v29 }
 0x48d   : > { %1897 = vst [vmem:[%s3350_s9 + $0x110] sm:$0xff] %v1839_v1 }
 0x48e   : > { %1898 = vst [vmem:[%s3350_s9 + $0x118] sm:$0xff] %v1841_v12 }
 0x490   : > { %v1844_v13 = vpop.f32.mrb[68].mxu1 }
 0x491   : > { %v1845_v15 = vadd.f32 %v1844_v13, %v1363_v24  ;;  %v1846_v16 = vpop.f32.mrb[69].mxu1 }
 0x492   : > { %v1847_v17 = vadd.f32 %v1846_v16, %v1367_v29  ;;  %v1848_v18 = vpop.f32.mrb[70].mxu1 }
 0x493   : > { %1903 = vst [vmem:[%s3350_s9 + $0x140] sm:$0xff] %v1845_v15  ;;  %v1849_v19 = vadd.f32 %v1848_v18, %v1363_v24  ;;  %v1850_v20 = vpop.f32.mrb[71].mxu1 }
 0x494   : > { %1904 = vst [vmem:[%s3350_s9 + $0x148] sm:$0xff] %v1847_v17  ;;  %v1851_v21 = vadd.f32 %v1850_v20, %v1367_v29 }
 0x495   : > { %1909 = vst [vmem:[%s3350_s9 + $0x170] sm:$0xff] %v1849_v19 }
 0x496   : > { %1910 = vst [vmem:[%s3350_s9 + $0x178] sm:$0xff] %v1851_v21 }
 0x498   : > { %v1854_v23 = vpop.f32.mrb[72].mxu1 }
 0x499   : > { %v1855_v14 = vadd.f32 %v1854_v23, %v1363_v24  ;;  %v1856_v25 = vpop.f32.mrb[73].mxu1 }
 0x49a   : > { %v1857_v26 = vadd.f32 %v1856_v25, %v1367_v29  ;;  %v1858_v28 = vpop.f32.mrb[74].mxu1 }
 0x49b   : > { %1915 = vst [vmem:[%s3350_s9 + $0x1a0] sm:$0xff] %v1855_v14  ;;  %v1859_v0 = vadd.f32 %v1858_v28, %v1363_v24  ;;  %v1860_v33 = vpop.f32.mrb[75].mxu1 }
 0x49c   : > { %1916 = vst [vmem:[%s3350_s9 + $0x1a8] sm:$0xff] %v1857_v26  ;;  %v1861_v34 = vadd.f32 %v1860_v33, %v1367_v29 }
 0x49d   : > { %1921 = vst [vmem:[%s3350_s9 + $0x1d0] sm:$0xff] %v1859_v0 }
 0x49e   : > { %1922 = vst [vmem:[%s3350_s9 + $0x1d8] sm:$0xff] %v1861_v34 }
 0x49f PF: > { %p25_p2 = scmp.ge.s32.totalorder %s3006_s24, 4   ;;  %s3507_s13 = smov %s2787_s14 }
 0x4a0   : > { %s3508_s14 = smov %s2791_s15  ;;  %s3509_s15 = smov %s3016_s25 }
 0x4a1   : > { %s3510_s16 = smov %s3006_s24  ;;  %27 = sbr.rel (!%p25_p2) target bundleno = 12 (0xc), region = 129 }
 0x4a8   :  { %1947 = vsyncpa [#allocation3], 1 }
 0x4a9   :  { %1949 = vsyncpa [#allocation3 + $0x1], 1 }
 0x4aa   :  { %1950 = vsyncpa [#allocation5], 1 }
 0x4ab   :  { %1952 = vsyncpa [#allocation5 + $0x1], 1 }
 0x4ac   :  { %1953 = vsyncpa [#allocation8], 1 }
 0x4ad   :  { %1954 = vsyncpa [#allocation11], 1 }

</bundles_post_ra>
